<compile_context>
chip_gen: v5e
topology: v5e:2x2
jax: 0.10.0
libtpu: 0.0.40
codegen_flags: <defaults>
</compile_context>

<pallas_src>
import functools

import jax
import jax.numpy as jnp
from jax.experimental import pallas as pl
from jax.experimental.pallas import tpu as pltpu

# cfg.MODEL.PIXEL_MEAN / PIXEL_STD (CenterNet defaults, already in 0..1 scale)
PIXEL_MEAN = (0.408, 0.447, 0.470)
PIXEL_STD = (0.289, 0.274, 0.278)

_VMEM_LIMIT = 32 * 1024 * 1024  # explicit scoped-VMEM limit (safe on v5e/v6e/v7x)


def _round_up(x, m):
    return ((x + m - 1) // m) * m


# ----------------------------------------------------------------------------
# Pallas kernels
# ----------------------------------------------------------------------------
def _conv_mm_kernel(p_ref, w_ref, b_ref, o_ref, *, relu):
    # p_ref: (1, TP, KK*Cin) bf16 im2col tile
    # w_ref: (KK*Cin, Cout)  bf16
    # b_ref: (1, Cout)       f32
    # o_ref: (1, TP, Cout)   f32
    acc = jnp.dot(p_ref[0], w_ref[...], preferred_element_type=jnp.float32)
    acc = acc + b_ref[...]
    if relu:
        acc = jnp.maximum(acc, 0.0)
    o_ref[0] = acc


def _fused_head_kernel(p_ref, wa_ref, ba_ref, wb_ref, bb_ref, o_ref):
    # Fused 3x3-conv + ReLU + (block-diagonal) 1x1-conv for all three heads.
    # p_ref : (1, TP, KK*C) bf16 im2col tile of up_fmap
    # wa_ref: (KK*C, 192)   bf16   ba_ref: (1, 192) f32
    # wb_ref: (192, 128)    bf16   bb_ref: (1, 128) f32
    # o_ref : (1, TP, 128)  f32    (lane-dense; sliced back down in the wrapper)
    h = jnp.dot(p_ref[0], wa_ref[...], preferred_element_type=jnp.float32)
    h = jnp.maximum(h + ba_ref[...], 0.0)
    out = jnp.dot(h.astype(wb_ref.dtype), wb_ref[...],
                  preferred_element_type=jnp.float32)
    o_ref[0] = out + bb_ref[...]


# ----------------------------------------------------------------------------
# Wrappers
# ----------------------------------------------------------------------------
def _im2col(x, kh, kw, stride, padding, pad_value=None):
    """Plain-JAX im2col producing (N, P, KK*Cin) with taps major / Cin minor."""
    n, h, w, cin = x.shape
    ho = (h + 2 * padding - kh) // stride + 1
    wo = (w + 2 * padding - kw) // stride + 1
    if padding > 0:
        pads = ((0, 0), (padding, padding), (padding, padding), (0, 0))
        if pad_value is None:
            xp = jnp.pad(x, pads)
        else:
            pv = jnp.asarray(pad_value, jnp.float32).reshape(1, 1, 1, cin)
            xp = jnp.pad(x - pv, pads) + pv
    else:
        xp = x
    slabs = []
    for i in range(kh):
        for j in range(kw):
            s = xp[:, i:i + stride * ho:stride, j:j + stride * wo:stride, :]
            slabs.append(s.reshape(n, ho * wo, cin))
    patches = jnp.concatenate(slabs, axis=-1)  # (N, P, KK*Cin)
    return patches, ho, wo


def _prep_patches(patches, kkc_pad):
    """Pad P to a multiple-of-16 tile (bf16 sublane packing) and the contraction
    dim to kkc_pad; cast matmul operand to bf16."""
    n, p, kkc = patches.shape
    p_pad = _round_up(p, 16)
    p_tile = min(p_pad, 512)
    p_pad = _round_up(p_pad, p_tile)
    patches = jnp.pad(patches, ((0, 0), (0, p_pad - p), (0, kkc_pad - kkc)))
    return patches.astype(jnp.bfloat16), p_tile, p_pad


def conv2d(x, w, b, *, stride=1, padding=1, relu=False, pad_value=None):
    """2-D convolution.  x: (N,H,W,Cin), w: (KH,KW,Cin,Cout), b: (Cout,)."""
    n, _, _, cin = x.shape
    kh, kw, _, cout = w.shape
    patches, ho, wo = _im2col(x, kh, kw, stride, padding, pad_value)
    p = ho * wo
    kkc = kh * kw * cin
    kkc_pad = _round_up(kkc, 16)
    patches, p_tile, p_pad = _prep_patches(patches, kkc_pad)

    w2 = jnp.pad(w.reshape(kkc, cout).astype(jnp.float32),
                 ((0, kkc_pad - kkc), (0, 0))).astype(jnp.bfloat16)
    b2 = b.reshape(1, cout).astype(jnp.float32)

    out = pl.pallas_call(
        functools.partial(_conv_mm_kernel, relu=relu),
        grid=(n, p_pad // p_tile),
        in_specs=[
            pl.BlockSpec((1, p_tile, kkc_pad), lambda i, j: (i, j, 0)),
            pl.BlockSpec((kkc_pad, cout), lambda i, j: (0, 0)),
            pl.BlockSpec((1, cout), lambda i, j: (0, 0)),
        ],
        out_specs=pl.BlockSpec((1, p_tile, cout), lambda i, j: (i, j, 0)),
        out_shape=jax.ShapeDtypeStruct((n, p_pad, cout), jnp.float32),
        compiler_params=pltpu.CompilerParams(
            dimension_semantics=("parallel", "parallel"),
            vmem_limit_bytes=_VMEM_LIMIT),
    )(patches, w2, b2)
    return out[:, :p, :].reshape(n, ho, wo, cout)


def fused_heads(x, wa, ba, wb, bb, out_channels):
    """Fused (3x3 conv + ReLU) -> block-diagonal 1x1 conv for all three heads."""
    n = x.shape[0]
    cin = x.shape[-1]
    ca = wa.shape[-1]          # 3 * head_ch
    cb = wb.shape[-1]          # 128 (lane-padded)
    patches, ho, wo = _im2col(x, 3, 3, 1, 1)
    p = ho * wo
    kkc = 9 * cin
    kkc_pad = _round_up(kkc, 16)
    patches, p_tile, p_pad = _prep_patches(patches, kkc_pad)

    wa2 = jnp.pad(wa.reshape(kkc, ca).astype(jnp.float32),
                  ((0, kkc_pad - kkc), (0, 0))).astype(jnp.bfloat16)
    ba2 = ba.reshape(1, ca).astype(jnp.float32)
    wb2 = wb.astype(jnp.bfloat16)
    bb2 = bb.reshape(1, cb).astype(jnp.float32)

    out = pl.pallas_call(
        _fused_head_kernel,
        grid=(n, p_pad // p_tile),
        in_specs=[
            pl.BlockSpec((1, p_tile, kkc_pad), lambda i, j: (i, j, 0)),
            pl.BlockSpec((kkc_pad, ca), lambda i, j: (0, 0)),
            pl.BlockSpec((1, ca), lambda i, j: (0, 0)),
            pl.BlockSpec((ca, cb), lambda i, j: (0, 0)),
            pl.BlockSpec((1, cb), lambda i, j: (0, 0)),
        ],
        out_specs=pl.BlockSpec((1, p_tile, cb), lambda i, j: (i, j, 0)),
        out_shape=jax.ShapeDtypeStruct((n, p_pad, cb), jnp.float32),
        compiler_params=pltpu.CompilerParams(
            dimension_semantics=("parallel", "parallel"),
            vmem_limit_bytes=_VMEM_LIMIT),
    )(patches, wa2, ba2, wb2, bb2)

    out = out[:, :p, :]
    results, off = [], 0
    for c in out_channels:
        results.append(out[:, :, off:off + c].reshape(n, ho, wo, c))
        off += c
    return results


def upsample_nearest2x(x):
    # plain-JAX nearest 2x; at these sizes XLA fuses it into the following im2col
    x = jnp.repeat(x, 2, axis=1)
    return jnp.repeat(x, 2, axis=2)


# ----------------------------------------------------------------------------
# Model
# ----------------------------------------------------------------------------
def _init_conv(key, kh, kw, cin, cout, bias_fill=0.0):
    wkey, _ = jax.random.split(key)
    fan_in = kh * kw * cin
    w = jax.random.normal(wkey, (kh, kw, cin, cout), jnp.float32) / jnp.sqrt(float(fan_in))
    b = jnp.full((cout,), bias_fill, jnp.float32)
    return w, b


class CenterNetPallas:
    """Synthetic CenterNet: backbone (stride 8) + upsample (x2) + hm/wh/reg heads."""

    def __init__(self, key, num_classes=4, backbone_ch=(16, 32, 64), head_ch=64):
        self.num_classes = num_classes
        self.head_ch = head_ch
        self.down_ratio = 4
        ks = jax.random.split(key, 16)
        c0, c1, c2 = backbone_ch
        # backbone: three stride-2 3x3 convs
        self.bb1 = _init_conv(ks[0], 3, 3, 3, c0)
        self.bb2 = _init_conv(ks[1], 3, 3, c0, c1)
        self.bb3 = _init_conv(ks[2], 3, 3, c1, c2)
        # upsample layer: nearest x2 + 3x3 conv (stand-in for DCN-deconv)
        self.up = _init_conv(ks[3], 3, 3, c2, head_ch)
        # heads: 3x3 conv + relu, then 1x1 conv
        self.hm_a = _init_conv(ks[4], 3, 3, head_ch, head_ch)
        self.hm_b = _init_conv(ks[5], 1, 1, head_ch, num_classes, bias_fill=-2.19)
        self.wh_a = _init_conv(ks[6], 3, 3, head_ch, head_ch)
        self.wh_b = _init_conv(ks[7], 1, 1, head_ch, 2)
        self.reg_a = _init_conv(ks[8], 3, 3, head_ch, head_ch)
        self.reg_b = _init_conv(ks[9], 1, 1, head_ch, 2)

        # --- fold preprocess (x/255 - mean)/std into the first conv (exact) ---
        mean = jnp.asarray(PIXEL_MEAN, jnp.float32)
        inv_std = jnp.asarray([1.0 / s for s in PIXEL_STD], jnp.float32)
        w1, b1 = self.bb1
        w1f = w1 * (inv_std / 255.0)[None, None, :, None]
        b1f = b1 - jnp.einsum("hwco,c->o", w1, mean * inv_std)
        self.bb1_folded = (w1f, b1f)
        # raw-pixel pad value equivalent to zero padding AFTER normalization
        self.bb1_pad_value = 255.0 * mean

        # --- fuse the three head branches into one 3x3 + one block-diag 1x1 ---
        self.head_outs = (num_classes, 2, 2)
        wa = jnp.concatenate([self.hm_a[0], self.wh_a[0], self.reg_a[0]], axis=-1)
        ba = jnp.concatenate([self.hm_a[1], self.wh_a[1], self.reg_a[1]], axis=-1)
        cb_pad = 128  # lane-dense output; sliced back down in the wrapper
        wb = jnp.zeros((3 * head_ch, cb_pad), jnp.float32)
        bb = jnp.zeros((cb_pad,), jnp.float32)
        row, col = 0, 0
        for (w1x1, b1x1), co in zip((self.hm_b, self.wh_b, self.reg_b), self.head_outs):
            wb = wb.at[row:row + head_ch, col:col + co].set(w1x1.reshape(head_ch, co))
            bb = bb.at[col:col + co].set(b1x1)
            row += head_ch
            col += co
        self.head_wa, self.head_ba = wa, ba
        self.head_wb, self.head_bb = wb, bb

    def forward(self, images_nchw):
        # NCHW (PyTorch convention) -> NHWC for the kernels.
        # Preprocess normalization is folded into bb1_folded (no separate pass).
        x = jnp.transpose(images_nchw, (0, 2, 3, 1)).astype(jnp.float32)

        # backbone
        x = conv2d(x, *self.bb1_folded, stride=2, padding=1, relu=True,
                   pad_value=self.bb1_pad_value)
        x = conv2d(x, *self.bb2, stride=2, padding=1, relu=True)
        x = conv2d(x, *self.bb3, stride=2, padding=1, relu=True)

        # upsample layer
        x = upsample_nearest2x(x)
        up_fmap = conv2d(x, *self.up, stride=1, padding=1, relu=True)

        # fused heads (raw logits, as in CenterNet head)
        hm, wh, reg = fused_heads(up_fmap, self.head_wa, self.head_ba,
                                  self.head_wb, self.head_bb, self.head_outs)
        outputs = {"hm": hm, "wh": wh, "reg": reg}
        # back to NCHW to match PyTorch output convention
        return {k: jnp.transpose(v, (0, 3, 1, 2)) for k, v in outputs.items()}


# ----------------------------------------------------------------------------
if __name__ == "__main__":
    key = jax.random.PRNGKey(0)
    mkey, dkey = jax.random.split(key)

    model = CenterNetPallas(mkey, num_classes=4)

    # batched_inputs images: (N=2, C=3, H=32, W=32), uint8-style values in [0, 255]
    images = jax.random.uniform(dkey, (2, 3, 32, 32), jnp.float32, minval=0.0, maxval=255.0)

    outs = jax.jit(model.forward)(images)
    jax.block_until_ready(outs)

    assert outs["hm"].shape == (2, 4, 8, 8)
    assert outs["wh"].shape == (2, 2, 8, 8)
    assert outs["reg"].shape == (2, 2, 8, 8)
    print("KERNEL_OK")
</pallas_src>

<mosaic_0001>
module attributes {stable_mosaic.version = 11 : i64} {
  func.func @_conv_mm_kernel(%arg0: i32, %arg1: i32, %arg2: memref<1x256x32xbf16, #tpu.memory_space<vmem>>, %arg3: memref<32x16xbf16, #tpu.memory_space<vmem>>, %arg4: memref<1x16xf32, #tpu.memory_space<vmem>>, %arg5: memref<1x256x16xf32, #tpu.memory_space<vmem>>) attributes {dimension_semantics = [#tpu.dimension_semantics<parallel>, #tpu.dimension_semantics<parallel>], iteration_bounds = array<i64: 2, 1>, scalar_prefetch = 0 : i64, scratch_operands = 0 : i64, tpu.core_type = #tpu.core_type<tc>, window_params = [{transform_indices = @transform_0, window_bounds = array<i64: 1, 256, 32>}, {pipeline_mode = #tpu.pipeline_mode<synchronous>, transform_indices = @transform_1, window_bounds = array<i64: 32, 16>}, {pipeline_mode = #tpu.pipeline_mode<synchronous>, transform_indices = @transform_2, window_bounds = array<i64: 1, 16>}, {transform_indices = @transform_3, window_bounds = array<i64: 1, 256, 16>}]} {
    %c0 = arith.constant 0 : index
    %c0_0 = arith.constant 0 : index
    %c0_1 = arith.constant 0 : index
    %0 = vector.load %arg2[%c0, %c0_0, %c0_1] : memref<1x256x32xbf16, #tpu.memory_space<vmem>>, vector<1x256x32xbf16>
    %1 = vector.shape_cast %0 : vector<1x256x32xbf16> to vector<256x32xbf16>
    %c0_2 = arith.constant 0 : index
    %c0_3 = arith.constant 0 : index
    %2 = vector.load %arg3[%c0_2, %c0_3] : memref<32x16xbf16, #tpu.memory_space<vmem>>, vector<32x16xbf16>
    %cst = arith.constant dense<0.000000e+00> : vector<256x16xf32>
    %3 = tpu.matmul %1, %2, %cst {dimension_numbers = #tpu.dot_dimension_numbers<[1], [0], [0], [1], [0, 0, 1, 1], [], []>} : vector<256x32xbf16>, vector<32x16xbf16>, vector<256x16xf32> -> vector<256x16xf32>
    %c0_4 = arith.constant 0 : index
    %c0_5 = arith.constant 0 : index
    %4 = vector.load %arg4[%c0_4, %c0_5] : memref<1x16xf32, #tpu.memory_space<vmem>>, vector<1x16xf32>
    %5 = vector.broadcast %4 : vector<1x16xf32> to vector<256x16xf32>
    %6 = arith.addf %3, %5 : vector<256x16xf32>
    %cst_6 = arith.constant 0.000000e+00 : f32
    %7 = vector.broadcast %cst_6 : f32 to vector<256x16xf32>
    %8 = arith.maximumf %6, %7 : vector<256x16xf32>
    %c0_7 = arith.constant 0 : index
    %c0_8 = arith.constant 0 : index
    %c0_9 = arith.constant 0 : index
    %9 = vector.load %arg5[%c0_7, %c0_8, %c0_9] : memref<1x256x16xf32, #tpu.memory_space<vmem>>, vector<1x256x16xf32>
    %10 = vector.shape_cast %9 : vector<1x256x16xf32> to vector<256x16xf32>
    %11 = vector.shape_cast %8 : vector<256x16xf32> to vector<1x256x16xf32>
    tpu.vector_store %arg5[%c0_7, %c0_8, %c0_9], %11 {strides = array<i32>} : memref<1x256x16xf32, #tpu.memory_space<vmem>>, vector<1x256x16xf32>,
    return
  }
  func.func @transform_0(%arg0: i32, %arg1: i32) -> (i32, i32, i32) {
    %c0_i32 = arith.constant 0 : i32
    %c0_i32_0 = arith.constant 0 : i32
    return %arg0, %arg1, %c0_i32 : i32, i32, i32
  }
  func.func @transform_1(%arg0: i32, %arg1: i32) -> (i32, i32) {
    %c0_i32 = arith.constant 0 : i32
    %c0_i32_0 = arith.constant 0 : i32
    %c0_i32_1 = arith.constant 0 : i32
    return %c0_i32, %c0_i32_0 : i32, i32
  }
  func.func @transform_2(%arg0: i32, %arg1: i32) -> (i32, i32) {
    %c0_i32 = arith.constant 0 : i32
    %c0_i32_0 = arith.constant 0 : i32
    %c0_i32_1 = arith.constant 0 : i32
    return %c0_i32, %c0_i32_0 : i32, i32
  }
  func.func @transform_3(%arg0: i32, %arg1: i32) -> (i32, i32, i32) {
    %c0_i32 = arith.constant 0 : i32
    %c0_i32_0 = arith.constant 0 : i32
    return %arg0, %arg1, %c0_i32 : i32, i32, i32
  }
}

module attributes {stable_mosaic.version = 11 : i64} {
  func.func @_conv_mm_kernel(%arg0: i32, %arg1: i32, %arg2: memref<1x64x144xbf16, #tpu.memory_space<vmem>>, %arg3: memref<144x32xbf16, #tpu.memory_space<vmem>>, %arg4: memref<1x32xf32, #tpu.memory_space<vmem>>, %arg5: memref<1x64x32xf32, #tpu.memory_space<vmem>>) attributes {dimension_semantics = [#tpu.dimension_semantics<parallel>, #tpu.dimension_semantics<parallel>], iteration_bounds = array<i64: 2, 1>, scalar_prefetch = 0 : i64, scratch_operands = 0 : i64, tpu.core_type = #tpu.core_type<tc>, window_params = [{transform_indices = @transform_0, window_bounds = array<i64: 1, 64, 144>}, {pipeline_mode = #tpu.pipeline_mode<synchronous>, transform_indices = @transform_1, window_bounds = array<i64: 144, 32>}, {pipeline_mode = #tpu.pipeline_mode<synchronous>, transform_indices = @transform_2, window_bounds = array<i64: 1, 32>}, {transform_indices = @transform_3, window_bounds = array<i64: 1, 64, 32>}]} {
    %c0 = arith.constant 0 : index
    %c0_0 = arith.constant 0 : index
    %c0_1 = arith.constant 0 : index
    %0 = vector.load %arg2[%c0, %c0_0, %c0_1] : memref<1x64x144xbf16, #tpu.memory_space<vmem>>, vector<1x64x144xbf16>
    %1 = vector.shape_cast %0 : vector<1x64x144xbf16> to vector<64x144xbf16>
    %c0_2 = arith.constant 0 : index
    %c0_3 = arith.constant 0 : index
    %2 = vector.load %arg3[%c0_2, %c0_3] : memref<144x32xbf16, #tpu.memory_space<vmem>>, vector<144x32xbf16>
    %cst = arith.constant dense<0.000000e+00> : vector<64x32xf32>
    %3 = tpu.matmul %1, %2, %cst {dimension_numbers = #tpu.dot_dimension_numbers<[1], [0], [0], [1], [0, 0, 1, 1], [], []>} : vector<64x144xbf16>, vector<144x32xbf16>, vector<64x32xf32> -> vector<64x32xf32>
    %c0_4 = arith.constant 0 : index
    %c0_5 = arith.constant 0 : index
    %4 = vector.load %arg4[%c0_4, %c0_5] : memref<1x32xf32, #tpu.memory_space<vmem>>, vector<1x32xf32>
    %5 = vector.broadcast %4 : vector<1x32xf32> to vector<64x32xf32>
    %6 = arith.addf %3, %5 : vector<64x32xf32>
    %cst_6 = arith.constant 0.000000e+00 : f32
    %7 = vector.broadcast %cst_6 : f32 to vector<64x32xf32>
    %8 = arith.maximumf %6, %7 : vector<64x32xf32>
    %c0_7 = arith.constant 0 : index
    %c0_8 = arith.constant 0 : index
    %c0_9 = arith.constant 0 : index
    %9 = vector.load %arg5[%c0_7, %c0_8, %c0_9] : memref<1x64x32xf32, #tpu.memory_space<vmem>>, vector<1x64x32xf32>
    %10 = vector.shape_cast %9 : vector<1x64x32xf32> to vector<64x32xf32>
    %11 = vector.shape_cast %8 : vector<64x32xf32> to vector<1x64x32xf32>
    tpu.vector_store %arg5[%c0_7, %c0_8, %c0_9], %11 {strides = array<i32>} : memref<1x64x32xf32, #tpu.memory_space<vmem>>, vector<1x64x32xf32>,
    return
  }
  func.func @transform_0(%arg0: i32, %arg1: i32) -> (i32, i32, i32) {
    %c0_i32 = arith.constant 0 : i32
    %c0_i32_0 = arith.constant 0 : i32
    return %arg0, %arg1, %c0_i32 : i32, i32, i32
  }
  func.func @transform_1(%arg0: i32, %arg1: i32) -> (i32, i32) {
    %c0_i32 = arith.constant 0 : i32
    %c0_i32_0 = arith.constant 0 : i32
    %c0_i32_1 = arith.constant 0 : i32
    return %c0_i32, %c0_i32_0 : i32, i32
  }
  func.func @transform_2(%arg0: i32, %arg1: i32) -> (i32, i32) {
    %c0_i32 = arith.constant 0 : i32
    %c0_i32_0 = arith.constant 0 : i32
    %c0_i32_1 = arith.constant 0 : i32
    return %c0_i32, %c0_i32_0 : i32, i32
  }
  func.func @transform_3(%arg0: i32, %arg1: i32) -> (i32, i32, i32) {
    %c0_i32 = arith.constant 0 : i32
    %c0_i32_0 = arith.constant 0 : i32
    return %arg0, %arg1, %c0_i32 : i32, i32, i32
  }
}

module attributes {stable_mosaic.version = 11 : i64} {
  func.func @_conv_mm_kernel(%arg0: i32, %arg1: i32, %arg2: memref<1x16x288xbf16, #tpu.memory_space<vmem>>, %arg3: memref<288x64xbf16, #tpu.memory_space<vmem>>, %arg4: memref<1x64xf32, #tpu.memory_space<vmem>>, %arg5: memref<1x16x64xf32, #tpu.memory_space<vmem>>) attributes {dimension_semantics = [#tpu.dimension_semantics<parallel>, #tpu.dimension_semantics<parallel>], iteration_bounds = array<i64: 2, 1>, scalar_prefetch = 0 : i64, scratch_operands = 0 : i64, tpu.core_type = #tpu.core_type<tc>, window_params = [{transform_indices = @transform_0, window_bounds = array<i64: 1, 16, 288>}, {pipeline_mode = #tpu.pipeline_mode<synchronous>, transform_indices = @transform_1, window_bounds = array<i64: 288, 64>}, {pipeline_mode = #tpu.pipeline_mode<synchronous>, transform_indices = @transform_2, window_bounds = array<i64: 1, 64>}, {transform_indices = @transform_3, window_bounds = array<i64: 1, 16, 64>}]} {
    %c0 = arith.constant 0 : index
    %c0_0 = arith.constant 0 : index
    %c0_1 = arith.constant 0 : index
    %0 = vector.load %arg2[%c0, %c0_0, %c0_1] : memref<1x16x288xbf16, #tpu.memory_space<vmem>>, vector<1x16x288xbf16>
    %1 = vector.shape_cast %0 : vector<1x16x288xbf16> to vector<16x288xbf16>
    %c0_2 = arith.constant 0 : index
    %c0_3 = arith.constant 0 : index
    %2 = vector.load %arg3[%c0_2, %c0_3] : memref<288x64xbf16, #tpu.memory_space<vmem>>, vector<288x64xbf16>
    %cst = arith.constant dense<0.000000e+00> : vector<16x64xf32>
    %3 = tpu.matmul %1, %2, %cst {dimension_numbers = #tpu.dot_dimension_numbers<[1], [0], [0], [1], [0, 0, 1, 1], [], []>} : vector<16x288xbf16>, vector<288x64xbf16>, vector<16x64xf32> -> vector<16x64xf32>
    %c0_4 = arith.constant 0 : index
    %c0_5 = arith.constant 0 : index
    %4 = vector.load %arg4[%c0_4, %c0_5] : memref<1x64xf32, #tpu.memory_space<vmem>>, vector<1x64xf32>
    %5 = vector.broadcast %4 : vector<1x64xf32> to vector<16x64xf32>
    %6 = arith.addf %3, %5 : vector<16x64xf32>
    %cst_6 = arith.constant 0.000000e+00 : f32
    %7 = vector.broadcast %cst_6 : f32 to vector<16x64xf32>
    %8 = arith.maximumf %6, %7 : vector<16x64xf32>
    %c0_7 = arith.constant 0 : index
    %c0_8 = arith.constant 0 : index
    %c0_9 = arith.constant 0 : index
    %9 = vector.load %arg5[%c0_7, %c0_8, %c0_9] : memref<1x16x64xf32, #tpu.memory_space<vmem>>, vector<1x16x64xf32>
    %10 = vector.shape_cast %9 : vector<1x16x64xf32> to vector<16x64xf32>
    %11 = vector.shape_cast %8 : vector<16x64xf32> to vector<1x16x64xf32>
    tpu.vector_store %arg5[%c0_7, %c0_8, %c0_9], %11 {strides = array<i32>} : memref<1x16x64xf32, #tpu.memory_space<vmem>>, vector<1x16x64xf32>,
    return
  }
  func.func @transform_0(%arg0: i32, %arg1: i32) -> (i32, i32, i32) {
    %c0_i32 = arith.constant 0 : i32
    %c0_i32_0 = arith.constant 0 : i32
    return %arg0, %arg1, %c0_i32 : i32, i32, i32
  }
  func.func @transform_1(%arg0: i32, %arg1: i32) -> (i32, i32) {
    %c0_i32 = arith.constant 0 : i32
    %c0_i32_0 = arith.constant 0 : i32
    %c0_i32_1 = arith.constant 0 : i32
    return %c0_i32, %c0_i32_0 : i32, i32
  }
  func.func @transform_2(%arg0: i32, %arg1: i32) -> (i32, i32) {
    %c0_i32 = arith.constant 0 : i32
    %c0_i32_0 = arith.constant 0 : i32
    %c0_i32_1 = arith.constant 0 : i32
    return %c0_i32, %c0_i32_0 : i32, i32
  }
  func.func @transform_3(%arg0: i32, %arg1: i32) -> (i32, i32, i32) {
    %c0_i32 = arith.constant 0 : i32
    %c0_i32_0 = arith.constant 0 : i32
    return %arg0, %arg1, %c0_i32 : i32, i32, i32
  }
}

module attributes {stable_mosaic.version = 11 : i64} {
  func.func @_conv_mm_kernel(%arg0: i32, %arg1: i32, %arg2: memref<1x64x576xbf16, #tpu.memory_space<vmem>>, %arg3: memref<576x64xbf16, #tpu.memory_space<vmem>>, %arg4: memref<1x64xf32, #tpu.memory_space<vmem>>, %arg5: memref<1x64x64xf32, #tpu.memory_space<vmem>>) attributes {dimension_semantics = [#tpu.dimension_semantics<parallel>, #tpu.dimension_semantics<parallel>], iteration_bounds = array<i64: 2, 1>, scalar_prefetch = 0 : i64, scratch_operands = 0 : i64, tpu.core_type = #tpu.core_type<tc>, window_params = [{transform_indices = @transform_0, window_bounds = array<i64: 1, 64, 576>}, {pipeline_mode = #tpu.pipeline_mode<synchronous>, transform_indices = @transform_1, window_bounds = array<i64: 576, 64>}, {pipeline_mode = #tpu.pipeline_mode<synchronous>, transform_indices = @transform_2, window_bounds = array<i64: 1, 64>}, {transform_indices = @transform_3, window_bounds = array<i64: 1, 64, 64>}]} {
    %c0 = arith.constant 0 : index
    %c0_0 = arith.constant 0 : index
    %c0_1 = arith.constant 0 : index
    %0 = vector.load %arg2[%c0, %c0_0, %c0_1] : memref<1x64x576xbf16, #tpu.memory_space<vmem>>, vector<1x64x576xbf16>
    %1 = vector.shape_cast %0 : vector<1x64x576xbf16> to vector<64x576xbf16>
    %c0_2 = arith.constant 0 : index
    %c0_3 = arith.constant 0 : index
    %2 = vector.load %arg3[%c0_2, %c0_3] : memref<576x64xbf16, #tpu.memory_space<vmem>>, vector<576x64xbf16>
    %cst = arith.constant dense<0.000000e+00> : vector<64x64xf32>
    %3 = tpu.matmul %1, %2, %cst {dimension_numbers = #tpu.dot_dimension_numbers<[1], [0], [0], [1], [0, 0, 1, 1], [], []>} : vector<64x576xbf16>, vector<576x64xbf16>, vector<64x64xf32> -> vector<64x64xf32>
    %c0_4 = arith.constant 0 : index
    %c0_5 = arith.constant 0 : index
    %4 = vector.load %arg4[%c0_4, %c0_5] : memref<1x64xf32, #tpu.memory_space<vmem>>, vector<1x64xf32>
    %5 = vector.broadcast %4 : vector<1x64xf32> to vector<64x64xf32>
    %6 = arith.addf %3, %5 : vector<64x64xf32>
    %cst_6 = arith.constant 0.000000e+00 : f32
    %7 = vector.broadcast %cst_6 : f32 to vector<64x64xf32>
    %8 = arith.maximumf %6, %7 : vector<64x64xf32>
    %c0_7 = arith.constant 0 : index
    %c0_8 = arith.constant 0 : index
    %c0_9 = arith.constant 0 : index
    %9 = vector.load %arg5[%c0_7, %c0_8, %c0_9] : memref<1x64x64xf32, #tpu.memory_space<vmem>>, vector<1x64x64xf32>
    %10 = vector.shape_cast %9 : vector<1x64x64xf32> to vector<64x64xf32>
    %11 = vector.shape_cast %8 : vector<64x64xf32> to vector<1x64x64xf32>
    tpu.vector_store %arg5[%c0_7, %c0_8, %c0_9], %11 {strides = array<i32>} : memref<1x64x64xf32, #tpu.memory_space<vmem>>, vector<1x64x64xf32>,
    return
  }
  func.func @transform_0(%arg0: i32, %arg1: i32) -> (i32, i32, i32) {
    %c0_i32 = arith.constant 0 : i32
    %c0_i32_0 = arith.constant 0 : i32
    return %arg0, %arg1, %c0_i32 : i32, i32, i32
  }
  func.func @transform_1(%arg0: i32, %arg1: i32) -> (i32, i32) {
    %c0_i32 = arith.constant 0 : i32
    %c0_i32_0 = arith.constant 0 : i32
    %c0_i32_1 = arith.constant 0 : i32
    return %c0_i32, %c0_i32_0 : i32, i32
  }
  func.func @transform_2(%arg0: i32, %arg1: i32) -> (i32, i32) {
    %c0_i32 = arith.constant 0 : i32
    %c0_i32_0 = arith.constant 0 : i32
    %c0_i32_1 = arith.constant 0 : i32
    return %c0_i32, %c0_i32_0 : i32, i32
  }
  func.func @transform_3(%arg0: i32, %arg1: i32) -> (i32, i32, i32) {
    %c0_i32 = arith.constant 0 : i32
    %c0_i32_0 = arith.constant 0 : i32
    return %arg0, %arg1, %c0_i32 : i32, i32, i32
  }
}

module attributes {stable_mosaic.version = 11 : i64} {
  func.func @_fused_head_kernel(%arg0: i32, %arg1: i32, %arg2: memref<1x64x576xbf16, #tpu.memory_space<vmem>>, %arg3: memref<576x192xbf16, #tpu.memory_space<vmem>>, %arg4: memref<1x192xf32, #tpu.memory_space<vmem>>, %arg5: memref<192x128xbf16, #tpu.memory_space<vmem>>, %arg6: memref<1x128xf32, #tpu.memory_space<vmem>>, %arg7: memref<1x64x128xf32, #tpu.memory_space<vmem>>) attributes {dimension_semantics = [#tpu.dimension_semantics<parallel>, #tpu.dimension_semantics<parallel>], iteration_bounds = array<i64: 2, 1>, scalar_prefetch = 0 : i64, scratch_operands = 0 : i64, tpu.core_type = #tpu.core_type<tc>, window_params = [{transform_indices = @transform_0, window_bounds = array<i64: 1, 64, 576>}, {pipeline_mode = #tpu.pipeline_mode<synchronous>, transform_indices = @transform_1, window_bounds = array<i64: 576, 192>}, {pipeline_mode = #tpu.pipeline_mode<synchronous>, transform_indices = @transform_2, window_bounds = array<i64: 1, 192>}, {pipeline_mode = #tpu.pipeline_mode<synchronous>, transform_indices = @transform_3, window_bounds = array<i64: 192, 128>}, {pipeline_mode = #tpu.pipeline_mode<synchronous>, transform_indices = @transform_4, window_bounds = array<i64: 1, 128>}, {transform_indices = @transform_5, window_bounds = array<i64: 1, 64, 128>}]} {
    %c0 = arith.constant 0 : index
    %c0_0 = arith.constant 0 : index
    %c0_1 = arith.constant 0 : index
    %0 = vector.load %arg2[%c0, %c0_0, %c0_1] : memref<1x64x576xbf16, #tpu.memory_space<vmem>>, vector<1x64x576xbf16>
    %1 = vector.shape_cast %0 : vector<1x64x576xbf16> to vector<64x576xbf16>
    %c0_2 = arith.constant 0 : index
    %c0_3 = arith.constant 0 : index
    %2 = vector.load %arg3[%c0_2, %c0_3] : memref<576x192xbf16, #tpu.memory_space<vmem>>, vector<576x192xbf16>
    %cst = arith.constant dense<0.000000e+00> : vector<64x192xf32>
    %3 = tpu.matmul %1, %2, %cst {dimension_numbers = #tpu.dot_dimension_numbers<[1], [0], [0], [1], [0, 0, 1, 1], [], []>} : vector<64x576xbf16>, vector<576x192xbf16>, vector<64x192xf32> -> vector<64x192xf32>
    %c0_4 = arith.constant 0 : index
    %c0_5 = arith.constant 0 : index
    %4 = vector.load %arg4[%c0_4, %c0_5] : memref<1x192xf32, #tpu.memory_space<vmem>>, vector<1x192xf32>
    %5 = vector.broadcast %4 : vector<1x192xf32> to vector<64x192xf32>
    %6 = arith.addf %3, %5 : vector<64x192xf32>
    %cst_6 = arith.constant 0.000000e+00 : f32
    %7 = vector.broadcast %cst_6 : f32 to vector<64x192xf32>
    %8 = arith.maximumf %6, %7 : vector<64x192xf32>
    %9 = arith.truncf %8 : vector<64x192xf32> to vector<64x192xbf16>
    %c0_7 = arith.constant 0 : index
    %c0_8 = arith.constant 0 : index
    %10 = vector.load %arg5[%c0_7, %c0_8] : memref<192x128xbf16, #tpu.memory_space<vmem>>, vector<192x128xbf16>
    %cst_9 = arith.constant dense<0.000000e+00> : vector<64x128xf32>
    %11 = tpu.matmul %9, %10, %cst_9 {dimension_numbers = #tpu.dot_dimension_numbers<[1], [0], [0], [1], [0, 0, 1, 1], [], []>} : vector<64x192xbf16>, vector<192x128xbf16>, vector<64x128xf32> -> vector<64x128xf32>
    %c0_10 = arith.constant 0 : index
    %c0_11 = arith.constant 0 : index
    %12 = vector.load %arg6[%c0_10, %c0_11] : memref<1x128xf32, #tpu.memory_space<vmem>>, vector<1x128xf32>
    %13 = vector.broadcast %12 : vector<1x128xf32> to vector<64x128xf32>
    %14 = arith.addf %11, %13 : vector<64x128xf32>
    %c0_12 = arith.constant 0 : index
    %c0_13 = arith.constant 0 : index
    %c0_14 = arith.constant 0 : index
    %15 = vector.load %arg7[%c0_12, %c0_13, %c0_14] : memref<1x64x128xf32, #tpu.memory_space<vmem>>, vector<1x64x128xf32>
    %16 = vector.shape_cast %15 : vector<1x64x128xf32> to vector<64x128xf32>
    %17 = vector.shape_cast %14 : vector<64x128xf32> to vector<1x64x128xf32>
    tpu.vector_store %arg7[%c0_12, %c0_13, %c0_14], %17 {strides = array<i32>} : memref<1x64x128xf32, #tpu.memory_space<vmem>>, vector<1x64x128xf32>,
    return
  }
  func.func @transform_0(%arg0: i32, %arg1: i32) -> (i32, i32, i32) {
    %c0_i32 = arith.constant 0 : i32
    %c0_i32_0 = arith.constant 0 : i32
    return %arg0, %arg1, %c0_i32 : i32, i32, i32
  }
  func.func @transform_1(%arg0: i32, %arg1: i32) -> (i32, i32) {
    %c0_i32 = arith.constant 0 : i32
    %c0_i32_0 = arith.constant 0 : i32
    %c0_i32_1 = arith.constant 0 : i32
    return %c0_i32, %c0_i32_0 : i32, i32
  }
  func.func @transform_2(%arg0: i32, %arg1: i32) -> (i32, i32) {
    %c0_i32 = arith.constant 0 : i32
    %c0_i32_0 = arith.constant 0 : i32
    %c0_i32_1 = arith.constant 0 : i32
    return %c0_i32, %c0_i32_0 : i32, i32
  }
  func.func @transform_3(%arg0: i32, %arg1: i32) -> (i32, i32) {
    %c0_i32 = arith.constant 0 : i32
    %c0_i32_0 = arith.constant 0 : i32
    %c0_i32_1 = arith.constant 0 : i32
    return %c0_i32, %c0_i32_0 : i32, i32
  }
  func.func @transform_4(%arg0: i32, %arg1: i32) -> (i32, i32) {
    %c0_i32 = arith.constant 0 : i32
    %c0_i32_0 = arith.constant 0 : i32
    %c0_i32_1 = arith.constant 0 : i32
    return %c0_i32, %c0_i32_0 : i32, i32
  }
  func.func @transform_5(%arg0: i32, %arg1: i32) -> (i32, i32, i32) {
    %c0_i32 = arith.constant 0 : i32
    %c0_i32_0 = arith.constant 0 : i32
    return %arg0, %arg1, %c0_i32 : i32, i32, i32
  }
}

</mosaic_0001>

<bundles_post_ra>
// kernel: forward.5
= control target key start
LH: loop header
LB: loop body
LE: loop exit
PB: predicated region body
PF: predicated region fallthrough
CT: control target
= control target key end

     0   :  { %s827_s12 = smov 0   ;;  %s829_s13 = smov 0   ;;  %s1007_s0 = inlined_call_operand.vmem [shape: bf16[2,256,32], index: 0, kind: input, shape index: {}]   ;;  %s1008_s1 = inlined_call_operand.vmem [shape: bf16[32,16], index: 1, kind: input, shape index: {}]   ;;  %s1009_s2 = inlined_call_operand.vmem [shape: f32[1,16], index: 2, kind: input, shape index: {}]   ;;  %s1010_s3 = inlined_call_operand.vmem [shape: f32[2,256,16], index: 3, kind: output, shape index: {}]  }
   0x1   :  { %s831_s14 = smov 0  }
   0x2 LB: > { %s25_s15 = sadd.s32 1, %s801_s13  ;;  %p637_p0 = scmp.ge.s32.totalorder %s805_s14, 1  ;;  %s805_s14 = sphi %s831_s14, %s13_s14   ;;  %s801_s13 = sphi %s829_s13, %s1012_s13   ;;  %s797_s12 = sphi %s827_s12, %s1011_s12  }
   0x3   : > { %p27_p1 = scmp.ge.s32.totalorder %s25_s15, 2  ;;  %p158_p2 = scmp.lt.s32.totalorder %s805_s14, 3 }
   0x5   : > { %s1014_s15 = smov (%p27_p1, %s25_s15), 0  ;;  %p159_p3 = pnand %p637_p0, %p158_p2 }
   0x6   : > { %p191_p4 = scmp.lt.s32.totalorder (!%p159_p3), %s797_s12, 1 }
   0x7   : > { %162 = sbr.rel (%p159_p3) target bundleno = 215 (0xd7), region = 32 }
   0xc   : > { %v751_v0 = vld [vmem:[%s1008_s1 + $0x8] sm:$0xff]  ;;  %v750_v1 = vld [vmem:[%s1008_s1] sm:$0xff]  ;;  %s1016_s12 = smov (!%p191_p4, %s797_s12), 1  ;;  %vm343_vm0 = vcmask 261120   ;;  %vm513_vm1 = vcmask 130048  }
   0xd   : > { %398 = vmatpush.bf16.msra.mxu0 %v751_v0  ;;  %752 = vmatpush.bf16.msra.mxu1 %v751_v0  ;;  %s732_s20 = sshll.u32 %s1016_s12, 7  ;;  %v894_v18 = vld [vmem:[%s1009_s2] ss:$0 sm:$0xff]  ;;  %s733_s26 = sshll.u32 %s1016_s12, 8 }
   0xe   : > { %753 = vmatpush.bf16.msra.mxu2 %v751_v0  ;;  %754 = vmatpush.bf16.msra.mxu3 %v751_v0  ;;  %s857_s23 = scalar_lea.vmem %s1007_s0, %s732_s20  ;;  %s902_s29 = scalar_lea.vmem %s1010_s3, %s733_s26 }
   0xf   : > { %v734_v2 = vld [vmem:[%s857_s23] sm:$0xff]  ;;  %v735_v6 = vld [vmem:[%s857_s23 + $0x8] sm:$0xff]  ;;  %v736_v10 = vld [vmem:[%s857_s23 + $0x10] sm:$0xff] }
  0x10   : > { %v738_v3 = vld [vmem:[%s857_s23 + $0x20] sm:$0xff]  ;;  %v739_v7 = vld [vmem:[%s857_s23 + $0x28] sm:$0xff]  ;;  %v740_v11 = vld [vmem:[%s857_s23 + $0x30] sm:$0xff] }
  0x11   : > { %399 = vmatpush.bf16.msra.mxu0 %v750_v1  ;;  %755 = vmatpush.bf16.msra.mxu1 %v750_v1  ;;  %v742_v4 = vld [vmem:[%s857_s23 + $0x40] sm:$0xff]  ;;  %v743_v8 = vld [vmem:[%s857_s23 + $0x48] sm:$0xff]  ;;  %v744_v12 = vld [vmem:[%s857_s23 + $0x50] sm:$0xff] }
  0x12   : > { %756 = vmatpush.bf16.msra.mxu2 %v750_v1  ;;  %757 = vmatpush.bf16.msra.mxu3 %v750_v1  ;;  %v746_v5 = vld [vmem:[%s857_s23 + $0x60] sm:$0xff]  ;;  %v747_v9 = vld [vmem:[%s857_s23 + $0x68] sm:$0xff]  ;;  %v748_v13 = vld [vmem:[%s857_s23 + $0x70] sm:$0xff] }
  0x13   : > { %v737_v14 = vld [vmem:[%s857_s23 + $0x18] sm:$0xff] }
  0x14   : > { %714 = vmatmul.msk.bf16.vlgmr.msra.gmra.mxu0 %vm343_vm0, %v734_v2  ;;  %718 = vmatmul.msk.bf16.vlgmr.msra.gmra.mxu1 %vm343_vm0, %v738_v3  ;;  %v741_v15 = vld [vmem:[%s857_s23 + $0x38] sm:$0xff] }
  0x15   : > { %722 = vmatmul.msk.bf16.vlgmr.msra.gmra.mxu2 %vm343_vm0, %v742_v4  ;;  %726 = vmatmul.msk.bf16.vlgmr.msra.gmra.mxu3 %vm343_vm0, %v746_v5  ;;  %v745_v16 = vld [vmem:[%s857_s23 + $0x58] sm:$0xff] }
  0x16   : > { %v749_v17 = vld [vmem:[%s857_s23 + $0x78] sm:$0xff] }
  0x24   : > { %715 = vmatmul.msk.bf16.gmra.mxu0 %vm343_vm0, %v735_v6  ;;  %719 = vmatmul.msk.bf16.gmra.mxu1 %vm343_vm0, %v739_v7 }
  0x25   : > { %723 = vmatmul.msk.bf16.gmra.mxu2 %vm343_vm0, %v743_v8  ;;  %727 = vmatmul.msk.bf16.gmra.mxu3 %vm343_vm0, %v747_v9 }
  0x34   : > { %716 = vmatmul.msk.bf16.gmra.mxu0 %vm343_vm0, %v736_v10  ;;  %720 = vmatmul.msk.bf16.gmra.mxu1 %vm343_vm0, %v740_v11 }
  0x35   : > { %724 = vmatmul.msk.bf16.gmra.mxu2 %vm343_vm0, %v744_v12  ;;  %728 = vmatmul.msk.bf16.gmra.mxu3 %vm343_vm0, %v748_v13 }
  0x44   : > { %717 = vmatmul.msk.bf16.gmra.mxu0 %vm343_vm0, %v737_v14  ;;  %721 = vmatmul.msk.bf16.gmra.mxu1 %vm343_vm0, %v741_v15 }
  0x45   : > { %725 = vmatmul.msk.bf16.gmra.mxu2 %vm343_vm0, %v745_v16  ;;  %729 = vmatmul.msk.bf16.gmra.mxu3 %vm343_vm0, %v749_v17 }
  0x91   : > { %v401_v19 = vpop.f32.mrf.mxu0  ;;  %v421_v20 = vpop.f32.mrf.mxu1 }
  0x92   : > { %v402_v21 = vadd.f32 %v894_v18, %v401_v19  ;;  %v422_v22 = vadd.f32 %v894_v18, %v421_v20 }
  0x94   : > { %v481_v23 = vmax.f32 %v402_v21, 0.0  ;;  %v489_v24 = vmax.f32 %v422_v22, 0.0 }
  0x96   : > { %514 = vst.msk [vmem:[%s902_s29] sm:$0xff] %vm513_vm1, %v481_v23 }
  0x97   : > { %522 = vst.msk [vmem:[%s902_s29 + $0x40] sm:$0xff] %vm513_vm1, %v489_v24 }
  0x98   : > { %v441_v25 = vpop.f32.mrf.mxu2  ;;  %v461_v26 = vpop.f32.mrf.mxu3 }
  0x99   : > { %v442_v27 = vadd.f32 %v894_v18, %v441_v25  ;;  %v462_v28 = vadd.f32 %v894_v18, %v461_v26  ;;  %v403_v29 = vpop.f32.mrf.mxu0  ;;  %v423_v30 = vpop.f32.mrf.mxu1 }
  0x9a   : > { %v404_v31 = vadd.f32 %v894_v18, %v403_v29  ;;  %v424_v32 = vadd.f32 %v894_v18, %v423_v30 }
  0x9b   : > { %v497_v33 = vmax.f32 %v442_v27, 0.0  ;;  %v505_v34 = vmax.f32 %v462_v28, 0.0 }
  0x9c   : > { %v482_v35 = vmax.f32 %v404_v31, 0.0  ;;  %v490_v36 = vmax.f32 %v424_v32, 0.0 }
  0x9d   : > { %530 = vst.msk [vmem:[%s902_s29 + $0x80] sm:$0xff] %vm513_vm1, %v497_v33 }
  0x9e   : > { %538 = vst.msk [vmem:[%s902_s29 + $0xc0] sm:$0xff] %vm513_vm1, %v505_v34 }
  0x9f   : > { %515 = vst.msk [vmem:[%s902_s29 + $0x8] sm:$0xff] %vm513_vm1, %v482_v35 }
  0xa0   : > { %523 = vst.msk [vmem:[%s902_s29 + $0x48] sm:$0xff] %vm513_vm1, %v490_v36  ;;  %v443_v37 = vpop.f32.mrf.mxu2  ;;  %v463_v38 = vpop.f32.mrf.mxu3 }
  0xa1   : > { %v444_v39 = vadd.f32 %v894_v18, %v443_v37  ;;  %v464_v40 = vadd.f32 %v894_v18, %v463_v38  ;;  %v406_v41 = vpop.f32.mrf.mxu0  ;;  %v426_v42 = vpop.f32.mrf.mxu1 }
  0xa2   : > { %v407_v43 = vadd.f32 %v894_v18, %v406_v41  ;;  %v427_v44 = vadd.f32 %v894_v18, %v426_v42 }
  0xa3   : > { %v498_v45 = vmax.f32 %v444_v39, 0.0  ;;  %v506_v46 = vmax.f32 %v464_v40, 0.0 }
  0xa4   : > { %v483_v47 = vmax.f32 %v407_v43, 0.0  ;;  %v491_v48 = vmax.f32 %v427_v44, 0.0 }
  0xa5   : > { %531 = vst.msk [vmem:[%s902_s29 + $0x88] sm:$0xff] %vm513_vm1, %v498_v45 }
  0xa6   : > { %539 = vst.msk [vmem:[%s902_s29 + $0xc8] sm:$0xff] %vm513_vm1, %v506_v46 }
  0xa7   : > { %516 = vst.msk [vmem:[%s902_s29 + $0x10] sm:$0xff] %vm513_vm1, %v483_v47 }
  0xa8   : > { %524 = vst.msk [vmem:[%s902_s29 + $0x50] sm:$0xff] %vm513_vm1, %v491_v48  ;;  %v446_v49 = vpop.f32.mrf.mxu2  ;;  %v466_v50 = vpop.f32.mrf.mxu3 }
  0xa9   : > { %v447_v51 = vadd.f32 %v894_v18, %v446_v49  ;;  %v467_v52 = vadd.f32 %v894_v18, %v466_v50  ;;  %v408_v53 = vpop.f32.mrf.mxu0  ;;  %v428_v54 = vpop.f32.mrf.mxu1 }
  0xaa   : > { %v409_v55 = vadd.f32 %v894_v18, %v408_v53  ;;  %v429_v56 = vadd.f32 %v894_v18, %v428_v54 }
  0xab   : > { %v499_v57 = vmax.f32 %v447_v51, 0.0  ;;  %v507_v58 = vmax.f32 %v467_v52, 0.0 }
  0xac   : > { %v484_v59 = vmax.f32 %v409_v55, 0.0  ;;  %v492_v60 = vmax.f32 %v429_v56, 0.0 }
  0xad   : > { %532 = vst.msk [vmem:[%s902_s29 + $0x90] sm:$0xff] %vm513_vm1, %v499_v57 }
  0xae   : > { %540 = vst.msk [vmem:[%s902_s29 + $0xd0] sm:$0xff] %vm513_vm1, %v507_v58 }
  0xaf   : > { %517 = vst.msk [vmem:[%s902_s29 + $0x18] sm:$0xff] %vm513_vm1, %v484_v59 }
  0xb0   : > { %525 = vst.msk [vmem:[%s902_s29 + $0x58] sm:$0xff] %vm513_vm1, %v492_v60  ;;  %v448_v61 = vpop.f32.mrf.mxu2  ;;  %v468_v62 = vpop.f32.mrf.mxu3 }
  0xb1   : > { %v449_v63 = vadd.f32 %v894_v18, %v448_v61  ;;  %v469_v0 = vadd.f32 %v894_v18, %v468_v62  ;;  %v411_v1 = vpop.f32.mrf.mxu0  ;;  %v431_v2 = vpop.f32.mrf.mxu1 }
  0xb2   : > { %v412_v3 = vadd.f32 %v894_v18, %v411_v1  ;;  %v432_v4 = vadd.f32 %v894_v18, %v431_v2 }
  0xb3   : > { %v500_v5 = vmax.f32 %v449_v63, 0.0  ;;  %v508_v6 = vmax.f32 %v469_v0, 0.0 }
  0xb4   : > { %v485_v7 = vmax.f32 %v412_v3, 0.0  ;;  %v493_v8 = vmax.f32 %v432_v4, 0.0 }
  0xb5   : > { %533 = vst.msk [vmem:[%s902_s29 + $0x98] sm:$0xff] %vm513_vm1, %v500_v5 }
  0xb6   : > { %541 = vst.msk [vmem:[%s902_s29 + $0xd8] sm:$0xff] %vm513_vm1, %v508_v6 }
  0xb7   : > { %518 = vst.msk [vmem:[%s902_s29 + $0x20] sm:$0xff] %vm513_vm1, %v485_v7 }
  0xb8   : > { %526 = vst.msk [vmem:[%s902_s29 + $0x60] sm:$0xff] %vm513_vm1, %v493_v8  ;;  %v451_v9 = vpop.f32.mrf.mxu2  ;;  %v471_v10 = vpop.f32.mrf.mxu3 }
  0xb9   : > { %v452_v11 = vadd.f32 %v894_v18, %v451_v9  ;;  %v472_v12 = vadd.f32 %v894_v18, %v471_v10  ;;  %v413_v13 = vpop.f32.mrf.mxu0  ;;  %v433_v14 = vpop.f32.mrf.mxu1 }
  0xba   : > { %v414_v15 = vadd.f32 %v894_v18, %v413_v13  ;;  %v434_v16 = vadd.f32 %v894_v18, %v433_v14 }
  0xbb   : > { %v501_v17 = vmax.f32 %v452_v11, 0.0  ;;  %v509_v19 = vmax.f32 %v472_v12, 0.0 }
  0xbc   : > { %v486_v20 = vmax.f32 %v414_v15, 0.0  ;;  %v494_v21 = vmax.f32 %v434_v16, 0.0 }
  0xbd   : > { %534 = vst.msk [vmem:[%s902_s29 + $0xa0] sm:$0xff] %vm513_vm1, %v501_v17 }
  0xbe   : > { %542 = vst.msk [vmem:[%s902_s29 + $0xe0] sm:$0xff] %vm513_vm1, %v509_v19 }
  0xbf   : > { %519 = vst.msk [vmem:[%s902_s29 + $0x28] sm:$0xff] %vm513_vm1, %v486_v20 }
  0xc0   : > { %527 = vst.msk [vmem:[%s902_s29 + $0x68] sm:$0xff] %vm513_vm1, %v494_v21  ;;  %v453_v22 = vpop.f32.mrf.mxu2  ;;  %v473_v23 = vpop.f32.mrf.mxu3 }
  0xc1   : > { %v454_v24 = vadd.f32 %v894_v18, %v453_v22  ;;  %v474_v25 = vadd.f32 %v894_v18, %v473_v23  ;;  %v416_v26 = vpop.f32.mrf.mxu0  ;;  %v436_v27 = vpop.f32.mrf.mxu1 }
  0xc2   : > { %v417_v28 = vadd.f32 %v894_v18, %v416_v26  ;;  %v437_v29 = vadd.f32 %v894_v18, %v436_v27 }
  0xc3   : > { %v502_v30 = vmax.f32 %v454_v24, 0.0  ;;  %v510_v31 = vmax.f32 %v474_v25, 0.0 }
  0xc4   : > { %v487_v32 = vmax.f32 %v417_v28, 0.0  ;;  %v495_v33 = vmax.f32 %v437_v29, 0.0 }
  0xc5   : > { %535 = vst.msk [vmem:[%s902_s29 + $0xa8] sm:$0xff] %vm513_vm1, %v502_v30 }
  0xc6   : > { %543 = vst.msk [vmem:[%s902_s29 + $0xe8] sm:$0xff] %vm513_vm1, %v510_v31 }
  0xc7   : > { %520 = vst.msk [vmem:[%s902_s29 + $0x30] sm:$0xff] %vm513_vm1, %v487_v32 }
  0xc8   : > { %528 = vst.msk [vmem:[%s902_s29 + $0x70] sm:$0xff] %vm513_vm1, %v495_v33  ;;  %v456_v34 = vpop.f32.mrf.mxu2  ;;  %v476_v35 = vpop.f32.mrf.mxu3 }
  0xc9   : > { %v457_v36 = vadd.f32 %v894_v18, %v456_v34  ;;  %v477_v37 = vadd.f32 %v894_v18, %v476_v35  ;;  %v418_v38 = vpop.f32.mrf.mxu0  ;;  %v438_v39 = vpop.f32.mrf.mxu1 }
  0xca   : > { %v419_v40 = vadd.f32 %v894_v18, %v418_v38  ;;  %v439_v41 = vadd.f32 %v894_v18, %v438_v39 }
  0xcb   : > { %v503_v42 = vmax.f32 %v457_v36, 0.0  ;;  %v511_v43 = vmax.f32 %v477_v37, 0.0 }
  0xcc   : > { %v488_v44 = vmax.f32 %v419_v40, 0.0  ;;  %v496_v45 = vmax.f32 %v439_v41, 0.0 }
  0xcd   : > { %536 = vst.msk [vmem:[%s902_s29 + $0xb0] sm:$0xff] %vm513_vm1, %v503_v42 }
  0xce   : > { %544 = vst.msk [vmem:[%s902_s29 + $0xf0] sm:$0xff] %vm513_vm1, %v511_v43 }
  0xcf   : > { %521 = vst.msk [vmem:[%s902_s29 + $0x38] sm:$0xff] %vm513_vm1, %v488_v44 }
  0xd0   : > { %529 = vst.msk [vmem:[%s902_s29 + $0x78] sm:$0xff] %vm513_vm1, %v496_v45  ;;  %v458_v46 = vpop.f32.mrf.mxu2  ;;  %v478_v47 = vpop.f32.mrf.mxu3 }
  0xd1   : > { %v459_v48 = vadd.f32 %v894_v18, %v458_v46  ;;  %v479_v49 = vadd.f32 %v894_v18, %v478_v47 }
  0xd3   : > { %v504_v50 = vmax.f32 %v459_v48, 0.0  ;;  %v512_v51 = vmax.f32 %v479_v49, 0.0 }
  0xd5   : > { %537 = vst.msk [vmem:[%s902_s29 + $0xb8] sm:$0xff] %vm513_vm1, %v504_v50 }
  0xd6   : > { %545 = vst.msk [vmem:[%s902_s29 + $0xf8] sm:$0xff] %vm513_vm1, %v512_v51 }
  0xd7 PF: > { %s13_s14 = sadd.s32 1, %s805_s14   ;;  %s1011_s12 = smov %s801_s13 }
  0xd8   : > { %p10_p5 = scmp.ge.s32.totalorder %s13_s14, 4   ;;  %s1012_s13 = smov %s1014_s15 }
  0xda   :  { %12 = sbr.rel (!%p10_p5) target bundleno = 2 (0x2), region = 62 }

// kernel: forward.6
= control target key start
LH: loop header
LB: loop body
LE: loop exit
PB: predicated region body
PF: predicated region fallthrough
CT: control target
= control target key end

     0   :  { %s692_s12 = smov 0   ;;  %s694_s13 = smov 0   ;;  %s802_s0 = inlined_call_operand.vmem [shape: bf16[2,64,144], index: 0, kind: input, shape index: {}]   ;;  %s803_s1 = inlined_call_operand.vmem [shape: bf16[144,32], index: 1, kind: input, shape index: {}]   ;;  %s804_s2 = inlined_call_operand.vmem [shape: f32[1,32], index: 2, kind: input, shape index: {}]   ;;  %s805_s3 = inlined_call_operand.vmem [shape: f32[2,64,32], index: 3, kind: output, shape index: {}]  }
   0x1   :  { %s696_s14 = smov 0  }
   0x2 LB: > { %s25_s15 = sadd.s32 1, %s666_s13  ;;  %p516_p0 = scmp.ge.s32.totalorder %s670_s14, 1  ;;  %s670_s14 = sphi %s696_s14, %s13_s14   ;;  %s666_s13 = sphi %s694_s13, %s807_s13   ;;  %s662_s12 = sphi %s692_s12, %s806_s12  }
   0x3   : > { %p27_p1 = scmp.ge.s32.totalorder %s25_s15, 2  ;;  %p159_p2 = scmp.lt.s32.totalorder %s670_s14, 3 }
   0x5   : > { %s809_s15 = smov (%p27_p1, %s25_s15), 0  ;;  %p160_p3 = pnand %p516_p0, %p159_p2 }
   0x6   : > { %p193_p4 = scmp.lt.s32.totalorder (!%p160_p3), %s662_s12, 1 }
   0x7   : > { %163 = sbr.rel (%p160_p3) target bundleno = 207 (0xcf), region = 32 }
   0xc   : > { %v612_v0 = vld [vmem:[%s803_s1 + $0x38] sm:$0xff]  ;;  %v613_v1 = vld [vmem:[%s803_s1 + $0x40] sm:$0xff]  ;;  %v611_v2 = vld [vmem:[%s803_s1 + $0x30] sm:$0xff]  ;;  %s811_s12 = smov (!%p193_p4, %s662_s12), 1  ;;  %vm334_vm0 = vcmask 130048   ;;  %vm413_vm1 = vcmask 261120  }
   0xd   : > { %347 = vmatpush.bf16.msra.mxu0 %v612_v0  ;;  %614 = vmatpush.bf16.msra.mxu2 %v612_v0  ;;  %s595_s22 = sshll.u32 %s811_s12, 6  ;;  %v610_v3 = vld [vmem:[%s803_s1 + $0x28] sm:$0xff]  ;;  %v609_v9 = vld [vmem:[%s803_s1 + $0x20] sm:$0xff]  ;;  %v608_v11 = vld [vmem:[%s803_s1 + $0x18] sm:$0xff] }
   0xe   : > { %622 = vmatpush.bf16.msra.mxu3 %v613_v1  ;;  %383 = vmatpush.bf16.msra.mxu1 %v613_v1  ;;  %s727_s25 = scalar_lea.vmem %s802_s0, %s595_s22  ;;  %v607_v12 = vld [vmem:[%s803_s1 + $0x10] sm:$0xff]  ;;  %v606_v16 = vld [vmem:[%s803_s1 + $0x8] sm:$0xff]  ;;  %v605_v17 = vld [vmem:[%s803_s1] sm:$0xff]  ;;  %s775_s19 = scalar_lea.vmem %s805_s3, %s595_s22 }
   0xf   : > { %v599_v4 = vld [vmem:[%s727_s25 + $0x14] sm:$0xf]  ;;  %v533_v5 = vld [vmem:[%s727_s25 + $0x18] sm:$0xf0]  ;;  %v597_v7 = vld [vmem:[%s727_s25 + $0x4] sm:$0xf] }
  0x10   : > { %v536_v6 = vor.u32 %v599_v4, %v533_v5  ;;  %v525_v8 = vld [vmem:[%s727_s25 + $0x8] sm:$0xf0]  ;;  %v601_v13 = vld [vmem:[%s727_s25 + $0x24] sm:$0xf]  ;;  %v523_v18 = vld [vmem:[%s727_s25] sm:$0xf] }
  0x11   : > { %348 = vmatpush.bf16.msra.mxu0 %v611_v2  ;;  %615 = vmatpush.bf16.msra.mxu2 %v611_v2  ;;  %v528_v10 = vor.u32 %v597_v7, %v525_v8  ;;  %v541_v14 = vld [vmem:[%s727_s25 + $0x28] sm:$0xf0]  ;;  %v598_v19 = vld [vmem:[%s727_s25 + $0x4] sm:$0xf0]  ;;  %v539_v20 = vld [vmem:[%s727_s25 + $0x20] sm:$0xf] }
  0x12   : > { %590 = vmatmul.msk.bf16.vlgmr.msra.gmra.mxu3 %vm334_vm0, %v536_v6  ;;  %v544_v15 = vor.u32 %v601_v13, %v541_v14  ;;  %v602_v21 = vld [vmem:[%s727_s25 + $0x24] sm:$0xf0]  ;;  %v524_v22 = vor.u32 %v598_v19, %v523_v18  ;;  %v603_v24 = vld [vmem:[%s727_s25 + $0x34] sm:$0xf]  ;;  %v549_v25 = vld [vmem:[%s727_s25 + $0x38] sm:$0xf0] }
  0x13   : > { %589 = vmatmul.msk.bf16.vlgmr.msra.gmra.mxu1 %vm334_vm0, %v528_v10  ;;  %v540_v23 = vor.u32 %v602_v21, %v539_v20  ;;  %v552_v26 = vor.u32 %v603_v24, %v549_v25  ;;  %v531_v27 = vld [vmem:[%s727_s25 + $0x10] sm:$0xf]  ;;  %v600_v28 = vld [vmem:[%s727_s25 + $0x14] sm:$0xf0]  ;;  %v647_v35 = vld [vmem:[%s804_s2] ss:$0 sm:$0xff] }
  0x14   : > { %v547_v29 = vld [vmem:[%s727_s25 + $0x30] sm:$0xf]  ;;  %v604_v30 = vld [vmem:[%s727_s25 + $0x34] sm:$0xf0]  ;;  %v532_v31 = vor.u32 %v600_v28, %v531_v27 }
  0x15   : > { %349 = vmatpush.bf16.msra.mxu0 %v610_v3  ;;  %616 = vmatpush.bf16.msra.mxu2 %v610_v3  ;;  %v548_v32 = vor.u32 %v604_v30, %v547_v29 }
  0x19   : > { %350 = vmatpush.bf16.msra.mxu0 %v609_v9  ;;  %617 = vmatpush.bf16.msra.mxu2 %v609_v9 }
  0x1d   : > { %351 = vmatpush.bf16.msra.mxu0 %v608_v11  ;;  %618 = vmatpush.bf16.msra.mxu2 %v608_v11 }
  0x21   : > { %352 = vmatpush.bf16.msra.mxu0 %v607_v12  ;;  %619 = vmatpush.bf16.msra.mxu2 %v607_v12 }
  0x22   : > { %591 = vmatmul.msk.bf16.gmra.mxu3 %vm334_vm0, %v544_v15 }
  0x25   : > { %353 = vmatpush.bf16.msra.mxu0 %v606_v16  ;;  %620 = vmatpush.bf16.msra.mxu2 %v606_v16 }
  0x29   : > { %354 = vmatpush.bf16.msra.mxu0 %v605_v17  ;;  %621 = vmatpush.bf16.msra.mxu2 %v605_v17 }
  0x2c   : > { %355 = vmatmul.bf16.vlgmr.msra.gmra.mxu0 %v524_v22  ;;  %365 = vmatmul.bf16.vlgmr.msra.gmra.mxu2 %v540_v23 }
  0x32   : > { %592 = vmatmul.msk.bf16.gmra.mxu3 %vm334_vm0, %v552_v26 }
  0x3c   : > { %360 = vmatmul.bf16.gmra.mxu0 %v532_v31  ;;  %370 = vmatmul.bf16.gmra.mxu2 %v548_v32 }
  0x90   : > { %v385_v36 = vpop.f32.mrf.mxu1 }
  0x95   : > { %v390_v33 = vpop.f32.mrf.mxu3 }
  0x98   : > { %v387_v45 = vpop.f32.mrf.mxu1 }
  0x9d   : > { %v392_v34 = vpop.f32.mrf.mxu3 }
  0xa5   : > { %v395_v39 = vpop.f32.mrf.mxu3 }
  0xa9   : > { %v356_v37 = vpop.f32.mrf.mxu0 }
  0xaa   : > { %v357_v38 = vadd.f32 %v647_v35, %v356_v37 }
  0xac   : > { %v386_v40 = vadd.f32 %v385_v36, %v357_v38 }
  0xad   : > { %v397_v50 = vpop.f32.mrf.mxu3 }
  0xae   : > { %v405_v41 = vmax.f32 %v386_v40, 0.0 }
  0xaf   : > { %v366_v42 = vpop.f32.mrf.mxu2 }
  0xb0   : > { %414 = vst.msk [vmem:[%s775_s19] sm:$0xff] %vm413_vm1, %v405_v41  ;;  %v367_v43 = vadd.f32 %v647_v35, %v366_v42 }
  0xb1   : > { %v358_v44 = vpop.f32.mrf.mxu0 }
  0xb2   : > { %v396_v46 = vadd.f32 %v395_v39, %v367_v43  ;;  %v359_v47 = vadd.f32 %v647_v35, %v358_v44 }
  0xb4   : > { %v409_v48 = vmax.f32 %v396_v46, 0.0  ;;  %v388_v49 = vadd.f32 %v387_v45, %v359_v47 }
  0xb5   : > { %v400_v60 = vpop.f32.mrf.mxu3 }
  0xb6   : > { %418 = vst.msk [vmem:[%s775_s19 + $0x20] sm:$0xff] %vm413_vm1, %v409_v48  ;;  %v406_v51 = vmax.f32 %v388_v49, 0.0 }
  0xb7   : > { %v368_v52 = vpop.f32.mrf.mxu2 }
  0xb8   : > { %415 = vst.msk [vmem:[%s775_s19 + $0x8] sm:$0xff] %vm413_vm1, %v406_v51  ;;  %v369_v53 = vadd.f32 %v647_v35, %v368_v52 }
  0xb9   : > { %v361_v54 = vpop.f32.mrf.mxu0 }
  0xba   : > { %v398_v55 = vadd.f32 %v397_v50, %v369_v53  ;;  %v362_v56 = vadd.f32 %v647_v35, %v361_v54 }
  0xbc   : > { %v410_v57 = vmax.f32 %v398_v55, 0.0  ;;  %v391_v58 = vadd.f32 %v390_v33, %v362_v56 }
  0xbd   : > { %v402_v7 = vpop.f32.mrf.mxu3 }
  0xbe   : > { %419 = vst.msk [vmem:[%s775_s19 + $0x28] sm:$0xff] %vm413_vm1, %v410_v57  ;;  %v407_v59 = vmax.f32 %v391_v58, 0.0 }
  0xbf   : > { %v371_v61 = vpop.f32.mrf.mxu2 }
  0xc0   : > { %416 = vst.msk [vmem:[%s775_s19 + $0x10] sm:$0xff] %vm413_vm1, %v407_v59  ;;  %v372_v62 = vadd.f32 %v647_v35, %v371_v61 }
  0xc1   : > { %v363_v63 = vpop.f32.mrf.mxu0 }
  0xc2   : > { %v401_v0 = vadd.f32 %v400_v60, %v372_v62  ;;  %v364_v1 = vadd.f32 %v647_v35, %v363_v63 }
  0xc4   : > { %v411_v2 = vmax.f32 %v401_v0, 0.0  ;;  %v393_v3 = vadd.f32 %v392_v34, %v364_v1 }
  0xc6   : > { %420 = vst.msk [vmem:[%s775_s19 + $0x30] sm:$0xff] %vm413_vm1, %v411_v2  ;;  %v408_v4 = vmax.f32 %v393_v3, 0.0 }
  0xc7   : > { %v373_v5 = vpop.f32.mrf.mxu2 }
  0xc8   : > { %417 = vst.msk [vmem:[%s775_s19 + $0x18] sm:$0xff] %vm413_vm1, %v408_v4  ;;  %v374_v6 = vadd.f32 %v647_v35, %v373_v5 }
  0xca   : > { %v403_v8 = vadd.f32 %v402_v7, %v374_v6 }
  0xcc   : > { %v412_v9 = vmax.f32 %v403_v8, 0.0 }
  0xce   : > { %421 = vst.msk [vmem:[%s775_s19 + $0x38] sm:$0xff] %vm413_vm1, %v412_v9 }
  0xcf PF: > { %s13_s14 = sadd.s32 1, %s670_s14   ;;  %s806_s12 = smov %s666_s13 }
  0xd0   : > { %p10_p5 = scmp.ge.s32.totalorder %s13_s14, 4   ;;  %s807_s13 = smov %s809_s15 }
  0xd2   :  { %12 = sbr.rel (!%p10_p5) target bundleno = 2 (0x2), region = 62 }

// kernel: forward.7
= control target key start
LH: loop header
LB: loop body
LE: loop exit
PB: predicated region body
PF: predicated region fallthrough
CT: control target
= control target key end

     0   :  { %s709_s12 = smov 0   ;;  %s711_s13 = smov 0   ;;  %s803_s0 = inlined_call_operand.vmem [shape: bf16[2,16,288], index: 0, kind: input, shape index: {}]   ;;  %s804_s1 = inlined_call_operand.vmem [shape: bf16[288,64], index: 1, kind: input, shape index: {}]   ;;  %s805_s2 = inlined_call_operand.vmem [shape: f32[1,64], index: 2, kind: input, shape index: {}]   ;;  %s806_s3 = inlined_call_operand.vmem [shape: f32[2,16,64], index: 3, kind: output, shape index: {}]  }
   0x1   :  { %s713_s14 = smov 0  }
   0x2 LB: > { %s25_s15 = sadd.s32 1, %s683_s13  ;;  %p526_p0 = scmp.ge.s32.totalorder %s687_s14, 1  ;;  %s687_s14 = sphi %s713_s14, %s13_s14   ;;  %s683_s13 = sphi %s711_s13, %s808_s13   ;;  %s679_s12 = sphi %s709_s12, %s807_s12  }
   0x3   : > { %p27_p1 = scmp.ge.s32.totalorder %s25_s15, 2  ;;  %p159_p2 = scmp.lt.s32.totalorder %s687_s14, 3 }
   0x5   : > { %s810_s15 = smov (%p27_p1, %s25_s15), 0  ;;  %p160_p3 = pnand %p526_p0, %p159_p2 }
   0x6   : > { %p193_p4 = scmp.lt.s32.totalorder (!%p160_p3), %s679_s12, 1 }
   0x7   : > { %163 = sbr.rel (%p160_p3) target bundleno = 187 (0xbb), region = 32 }
   0xc   : > { %v628_v0 = vld [vmem:[%s804_s1 + $0x38] sm:$0xff]  ;;  %v627_v2 = vld [vmem:[%s804_s1 + $0x30] sm:$0xff]  ;;  %v638_v4 = vld [vmem:[%s804_s1 + $0x88] sm:$0xff]  ;;  %s812_s12 = smov (!%p193_p4, %s679_s12), 1  ;;  %vm381_vm0 = vcmask 261120   ;;  %vm429_vm1 = vcmask 523264  }
   0xd   : > { %v636_v1 = vld [vmem:[%s804_s1 + $0x78] sm:$0xff]  ;;  %385 = vmatpush.bf16.msra.mxu0 %v628_v0  ;;  %v635_v3 = vld [vmem:[%s804_s1 + $0x70] sm:$0xff]  ;;  %419 = vmatpush.bf16.msra.mxu2 %v638_v4  ;;  %v637_v5 = vld [vmem:[%s804_s1 + $0x80] sm:$0xff]  ;;  %s639_s28 = smul.u32 24, %s812_s12  ;;  %s617_s9 = sshll.u32 %s812_s12, 4 }
   0xe   : > { %399 = vmatpush.bf16.msra.mxu1 %v636_v1  ;;  %v626_v6 = vld [vmem:[%s804_s1 + $0x28] sm:$0xff]  ;;  %v625_v11 = vld [vmem:[%s804_s1 + $0x20] sm:$0xff]  ;;  %v624_v13 = vld [vmem:[%s804_s1 + $0x18] sm:$0xff] }
   0xf   : > { %v634_v7 = vld [vmem:[%s804_s1 + $0x68] sm:$0xff]  ;;  %s201_s8 = scalar_lea.vmem %s803_s0, %s639_s28  ;;  %v633_v12 = vld [vmem:[%s804_s1 + $0x60] sm:$0xff]  ;;  %v632_v14 = vld [vmem:[%s804_s1 + $0x58] sm:$0xff] }
  0x10   : > { %v540_v8 = vld [vmem:[%s201_s8 + $0x8] sm:$0xf]  ;;  %v620_v9 = vld [vmem:[%s201_s8 + $0x10] sm:$0xf0]  ;;  %v621_v19 = vld [vmem:[%s804_s1] sm:$0xff] }
  0x11   : > { %386 = vmatpush.bf16.msra.mxu0 %v627_v2  ;;  %420 = vmatpush.bf16.msra.mxu2 %v637_v5  ;;  %v541_v10 = vor.u32 %v620_v9, %v540_v8  ;;  %v623_v15 = vld [vmem:[%s804_s1 + $0x10] sm:$0xff]  ;;  %v622_v17 = vld [vmem:[%s804_s1 + $0x8] sm:$0xff]  ;;  %v629_v20 = vld [vmem:[%s804_s1 + $0x40] sm:$0xff] }
  0x12   : > { %400 = vmatpush.bf16.msra.mxu1 %v635_v3  ;;  %v631_v16 = vld [vmem:[%s804_s1 + $0x50] sm:$0xff]  ;;  %v630_v18 = vld [vmem:[%s804_s1 + $0x48] sm:$0xff]  ;;  %v532_v21 = vld [vmem:[%s201_s8] sm:$0xf] }
  0x13   : > { %v619_v22 = vld [vmem:[%s201_s8 + $0x8] sm:$0xf0]  ;;  %v618_v23 = vld [vmem:[%s201_s8 + $0x4] sm:$0xf]  ;;  %v534_v24 = vld [vmem:[%s201_s8 + $0xc] sm:$0xf0]  ;;  %s211_s8 = scalar_lea.vmem %s806_s3, %s617_s9 }
  0x14   : > { %614 = vmatmul.msk.bf16.vlgmr.msra.gmra.mxu2 %vm381_vm0, %v541_v10  ;;  %v533_v25 = vor.u32 %v619_v22, %v532_v21  ;;  %v537_v26 = vor.u32 %v618_v23, %v534_v24  ;;  %v664_v27 = vld [vmem:[%s805_s2] ss:$0 sm:$0xff] }
  0x15   : > { %387 = vmatpush.bf16.msra.mxu0 %v626_v6 }
  0x16   : > { %401 = vmatpush.bf16.msra.mxu1 %v634_v7 }
  0x19   : > { %388 = vmatpush.bf16.msra.mxu0 %v625_v11 }
  0x1a   : > { %402 = vmatpush.bf16.msra.mxu1 %v633_v12 }
  0x1d   : > { %389 = vmatpush.bf16.msra.mxu0 %v624_v13 }
  0x1e   : > { %403 = vmatpush.bf16.msra.mxu1 %v632_v14 }
  0x21   : > { %390 = vmatpush.bf16.msra.mxu0 %v623_v15 }
  0x22   : > { %404 = vmatpush.bf16.msra.mxu1 %v631_v16 }
  0x25   : > { %391 = vmatpush.bf16.msra.mxu0 %v622_v17 }
  0x26   : > { %405 = vmatpush.bf16.msra.mxu1 %v630_v18 }
  0x29   : > { %392 = vmatpush.bf16.msra.mxu0 %v621_v19 }
  0x2a   : > { %406 = vmatpush.bf16.msra.mxu1 %v629_v20 }
  0x2c   : > { %393 = vmatmul.bf16.vlgmr.msra.gmra.mxu0 %v533_v25 }
  0x2d   : > { %407 = vmatmul.bf16.vlgmr.msra.gmra.mxu1 %v537_v26 }
  0x97   : > { %v422_v31 = vpop.f32.mrf.mxu2 }
  0x9f   : > { %v424_v39 = vpop.f32.mrf.mxu2 }
  0xa9   : > { %v394_v28 = vpop.f32.mrf.mxu0 }
  0xaa   : > { %v408_v29 = vpop.f32.mrf.mxu1  ;;  %v395_v30 = vadd.f32 %v664_v27, %v394_v28 }
  0xac   : > { %v409_v32 = vadd.f32 %v408_v29, %v395_v30 }
  0xae   : > { %v423_v33 = vadd.f32 %v422_v31, %v409_v32 }
  0xb0   : > { %v427_v34 = vmax.f32 %v423_v33, 0.0 }
  0xb1   : > { %v396_v35 = vpop.f32.mrf.mxu0 }
  0xb2   : > { %430 = vst.msk [vmem:[%s211_s8] sm:$0xff] %vm429_vm1, %v427_v34  ;;  %v397_v36 = vadd.f32 %v664_v27, %v396_v35  ;;  %v410_v37 = vpop.f32.mrf.mxu1 }
  0xb4   : > { %v411_v38 = vadd.f32 %v410_v37, %v397_v36 }
  0xb6   : > { %v425_v40 = vadd.f32 %v424_v39, %v411_v38 }
  0xb8   : > { %v428_v41 = vmax.f32 %v425_v40, 0.0 }
  0xba   : > { %431 = vst.msk [vmem:[%s211_s8 + $0x8] sm:$0xff] %vm429_vm1, %v428_v41 }
  0xbb PF: > { %s13_s14 = sadd.s32 1, %s687_s14   ;;  %s807_s12 = smov %s683_s13 }
  0xbc   : > { %p10_p5 = scmp.ge.s32.totalorder %s13_s14, 4   ;;  %s808_s13 = smov %s810_s15 }
  0xbe   :  { %12 = sbr.rel (!%p10_p5) target bundleno = 2 (0x2), region = 62 }

// kernel: forward.8
= control target key start
LH: loop header
LB: loop body
LE: loop exit
PB: predicated region body
PF: predicated region fallthrough
CT: control target
= control target key end

     0   :  { %s1275_s12 = smov 0   ;;  %s1277_s13 = smov 0   ;;  %s1507_s0 = inlined_call_operand.vmem [shape: bf16[2,64,576], index: 0, kind: input, shape index: {}]   ;;  %s1508_s1 = inlined_call_operand.vmem [shape: bf16[576,64], index: 1, kind: input, shape index: {}]   ;;  %s1509_s2 = inlined_call_operand.vmem [shape: f32[1,64], index: 2, kind: input, shape index: {}]   ;;  %s1510_s3 = inlined_call_operand.vmem [shape: f32[2,64,64], index: 3, kind: output, shape index: {}]  }
   0x1   :  { %s1279_s14 = smov 0  }
   0x2 LB: > { %s25_s15 = sadd.s32 1, %s1249_s13  ;;  %p898_p0 = scmp.ge.s32.totalorder %s1253_s14, 1  ;;  %s1253_s14 = sphi %s1279_s14, %s13_s14   ;;  %s1249_s13 = sphi %s1277_s13, %s1512_s13   ;;  %s1245_s12 = sphi %s1275_s12, %s1511_s12  }
   0x3   : > { %p27_p1 = scmp.ge.s32.totalorder %s25_s15, 2  ;;  %p159_p2 = scmp.lt.s32.totalorder %s1253_s14, 3 }
   0x5   : > { %s1514_s15 = smov (%p27_p1, %s25_s15), 0  ;;  %p160_p3 = pnand %p898_p0, %p159_p2 }
   0x6   : > { %p193_p4 = scmp.lt.s32.totalorder (!%p160_p3), %s1245_s12, 1 }
   0x7   : > { %163 = sbr.rel (%p160_p3) target bundleno = 273 (0x111), region = 32 }
   0xc   : > { %v1160_v0 = vld [vmem:[%s1508_s1 + $0x38] sm:$0xff]  ;;  %v1159_v1 = vld [vmem:[%s1508_s1 + $0x30] sm:$0xff]  ;;  %v1158_v4 = vld [vmem:[%s1508_s1 + $0x28] sm:$0xff]  ;;  %s1516_s12 = smov (!%p193_p4, %s1245_s12), 1  ;;  %vm630_vm0 = vcmask 523264  }
   0xd   : > { %1189 = vmatpush.bf16.msra.mxu1 %v1160_v0  ;;  %1190 = vmatpush.bf16.msra.mxu2 %v1160_v0  ;;  %v1184_v2 = vld [vmem:[%s1508_s1 + $0xf8] sm:$0xff]  ;;  %v1183_v3 = vld [vmem:[%s1508_s1 + $0xf0] sm:$0xff]  ;;  %v1182_v5 = vld [vmem:[%s1508_s1 + $0xe8] sm:$0xff]  ;;  %s1205_s11 = smul.u32 160, %s1516_s12 }
   0xe   : > { %643 = vmatpush.bf16.msra.mxu0 %v1160_v0  ;;  %730 = vmatpush.bf16.msra.mxu3 %v1184_v2  ;;  %v1157_v6 = vld [vmem:[%s1508_s1 + $0x20] sm:$0xff]  ;;  %v1156_v8 = vld [vmem:[%s1508_s1 + $0x18] sm:$0xff]  ;;  %v1155_v10 = vld [vmem:[%s1508_s1 + $0x10] sm:$0xff] }
   0xf   : > { %v1181_v7 = vld [vmem:[%s1508_s1 + $0xe0] sm:$0xff]  ;;  %v1180_v9 = vld [vmem:[%s1508_s1 + $0xd8] sm:$0xff]  ;;  %v1179_v11 = vld [vmem:[%s1508_s1 + $0xd0] sm:$0xff]  ;;  %s1342_s22 = scalar_lea.vmem %s1507_s0, %s1205_s11 }
  0x10   : > { %v1154_v12 = vld [vmem:[%s1508_s1 + $0x8] sm:$0xff]  ;;  %v1153_v14 = vld [vmem:[%s1508_s1] sm:$0xff]  ;;  %v1140_v16 = vld [vmem:[%s1342_s22 + $0x38] sm:$0xf0] }
  0x11   : > { %1191 = vmatpush.bf16.msra.mxu1 %v1159_v1  ;;  %1192 = vmatpush.bf16.msra.mxu2 %v1159_v1  ;;  %v1178_v13 = vld [vmem:[%s1508_s1 + $0xc8] sm:$0xff]  ;;  %v964_v17 = vld [vmem:[%s1342_s22 + $0x78] sm:$0xf]  ;;  %v904_v21 = vld [vmem:[%s1342_s22] sm:$0xf] }
  0x12   : > { %644 = vmatpush.bf16.msra.mxu0 %v1159_v1  ;;  %731 = vmatpush.bf16.msra.mxu3 %v1183_v3  ;;  %v924_v15 = vld [vmem:[%s1342_s22 + $0x28] sm:$0xf]  ;;  %v1150_v18 = vld [vmem:[%s1342_s22 + $0x88] sm:$0xf0]  ;;  %v1176_v19 = vld [vmem:[%s1508_s1 + $0xb8] sm:$0xff] }
  0x13   : > { %v1168_v20 = vld [vmem:[%s1508_s1 + $0x78] sm:$0xff]  ;;  %v1177_v22 = vld [vmem:[%s1508_s1 + $0xc0] sm:$0xff]  ;;  %v925_v23 = vor.u32 %v1140_v16, %v924_v15  ;;  %v965_v24 = vor.u32 %v1150_v18, %v964_v17  ;;  %v1135_v25 = vld [vmem:[%s1342_s22 + $0x10] sm:$0xf0] }
  0x14   : > { %v1134_v26 = vld [vmem:[%s1342_s22 + $0xc] sm:$0xf]  ;;  %v914_v27 = vld [vmem:[%s1342_s22 + $0x1c] sm:$0xf0]  ;;  %v1188_v28 = vld [vmem:[%s1508_s1 + $0x118] sm:$0xff]  ;;  %v905_v31 = vor.u32 %v1135_v25, %v904_v21 }
  0x15   : > { %1193 = vmatpush.bf16.msra.mxu1 %v1158_v4  ;;  %1194 = vmatpush.bf16.msra.mxu2 %v1158_v4  ;;  %v1175_v29 = vld [vmem:[%s1508_s1 + $0xb0] sm:$0xff]  ;;  %v917_v32 = vor.u32 %v1134_v26, %v914_v27  ;;  %v1174_v34 = vld [vmem:[%s1508_s1 + $0xa8] sm:$0xff]  ;;  %v1173_v37 = vld [vmem:[%s1508_s1 + $0xa0] sm:$0xff] }
  0x16   : > { %645 = vmatpush.bf16.msra.mxu0 %v1158_v4  ;;  %732 = vmatpush.bf16.msra.mxu3 %v1182_v5  ;;  %v1167_v30 = vld [vmem:[%s1508_s1 + $0x70] sm:$0xff]  ;;  %v1166_v35 = vld [vmem:[%s1508_s1 + $0x68] sm:$0xff]  ;;  %v1165_v38 = vld [vmem:[%s1508_s1 + $0x60] sm:$0xff] }
  0x17   : > { %v1187_v33 = vld [vmem:[%s1508_s1 + $0x110] sm:$0xff]  ;;  %v1186_v36 = vld [vmem:[%s1508_s1 + $0x108] sm:$0xff]  ;;  %v1145_v40 = vld [vmem:[%s1342_s22 + $0x60] sm:$0xf0] }
  0x18   : > { %v944_v39 = vld [vmem:[%s1342_s22 + $0x50] sm:$0xf]  ;;  %v1185_v41 = vld [vmem:[%s1508_s1 + $0x100] sm:$0xff]  ;;  %v1172_v42 = vld [vmem:[%s1508_s1 + $0x98] sm:$0xff] }
  0x19   : > { %1195 = vmatpush.bf16.msra.mxu1 %v1157_v6  ;;  %1196 = vmatpush.bf16.msra.mxu2 %v1157_v6  ;;  %v1164_v43 = vld [vmem:[%s1508_s1 + $0x58] sm:$0xff]  ;;  %v920_v44 = vld [vmem:[%s1342_s22 + $0x10] sm:$0xf]  ;;  %v945_v45 = vor.u32 %v1145_v40, %v944_v39  ;;  %v1137_v46 = vld [vmem:[%s1342_s22 + $0x20] sm:$0xf0] }
  0x1a   : > { %646 = vmatpush.bf16.msra.mxu0 %v1157_v6  ;;  %733 = vmatpush.bf16.msra.mxu3 %v1181_v7  ;;  %v1139_v47 = vld [vmem:[%s1342_s22 + $0x34] sm:$0xf]  ;;  %v934_v48 = vld [vmem:[%s1342_s22 + $0x44] sm:$0xf0]  ;;  %v921_v51 = vor.u32 %v1137_v46, %v920_v44  ;;  %v1169_v55 = vld [vmem:[%s1508_s1 + $0x80] sm:$0xff] }
  0x1b   : > { %v1171_v49 = vld [vmem:[%s1508_s1 + $0x90] sm:$0xff]  ;;  %v937_v52 = vor.u32 %v1139_v47, %v934_v48  ;;  %v1170_v53 = vld [vmem:[%s1508_s1 + $0x88] sm:$0xff]  ;;  %v1161_v56 = vld [vmem:[%s1508_s1 + $0x40] sm:$0xff] }
  0x1c   : > { %v1163_v50 = vld [vmem:[%s1508_s1 + $0x50] sm:$0xff]  ;;  %v1162_v54 = vld [vmem:[%s1508_s1 + $0x48] sm:$0xff]  ;;  %v1136_v58 = vld [vmem:[%s1342_s22 + $0x18] sm:$0xf0] }
  0x1d   : > { %1197 = vmatpush.bf16.msra.mxu1 %v1156_v8  ;;  %1198 = vmatpush.bf16.msra.mxu2 %v1156_v8  ;;  %v912_v57 = vld [vmem:[%s1342_s22 + $0x8] sm:$0xf]  ;;  %v1133_v60 = vld [vmem:[%s1342_s22 + $0x4] sm:$0xf]  ;;  %v906_v61 = vld [vmem:[%s1342_s22 + $0x14] sm:$0xf0] }
  0x1e   : > { %647 = vmatpush.bf16.msra.mxu0 %v1156_v8  ;;  %734 = vmatpush.bf16.msra.mxu3 %v1180_v9  ;;  %v913_v59 = vor.u32 %v1136_v58, %v912_v57  ;;  %v940_v62 = vld [vmem:[%s1342_s22 + $0x38] sm:$0xf]  ;;  %v909_v63 = vor.u32 %v1133_v60, %v906_v61  ;;  %v1142_v0 = vld [vmem:[%s1342_s22 + $0x48] sm:$0xf0]  ;;  %v1144_v1 = vld [vmem:[%s1342_s22 + $0x5c] sm:$0xf] }
  0x1f   : > { %v954_v2 = vld [vmem:[%s1342_s22 + $0x6c] sm:$0xf0]  ;;  %v941_v3 = vor.u32 %v1142_v0, %v940_v62  ;;  %v1141_v6 = vld [vmem:[%s1342_s22 + $0x40] sm:$0xf0]  ;;  %v1138_v8 = vld [vmem:[%s1342_s22 + $0x2c] sm:$0xf] }
  0x20   : > { %v957_v4 = vor.u32 %v1144_v1, %v954_v2  ;;  %v932_v5 = vld [vmem:[%s1342_s22 + $0x30] sm:$0xf]  ;;  %v926_v9 = vld [vmem:[%s1342_s22 + $0x3c] sm:$0xf0]  ;;  %v952_v17 = vld [vmem:[%s1342_s22 + $0x58] sm:$0xf] }
  0x21   : > { %1199 = vmatpush.bf16.msra.mxu1 %v1155_v10  ;;  %1200 = vmatpush.bf16.msra.mxu2 %v1155_v10  ;;  %v933_v7 = vor.u32 %v1141_v6, %v932_v5  ;;  %v1146_v18 = vld [vmem:[%s1342_s22 + $0x68] sm:$0xf0]  ;;  %v946_v21 = vld [vmem:[%s1342_s22 + $0x64] sm:$0xf0]  ;;  %v972_v26 = vld [vmem:[%s1342_s22 + $0x80] sm:$0xf] }
  0x22   : > { %648 = vmatpush.bf16.msra.mxu0 %v1155_v10  ;;  %735 = vmatpush.bf16.msra.mxu3 %v1179_v11  ;;  %v960_v10 = vld [vmem:[%s1342_s22 + $0x60] sm:$0xf]  ;;  %v929_v11 = vor.u32 %v1138_v8, %v926_v9  ;;  %v1151_v27 = vld [vmem:[%s1342_s22 + $0x90] sm:$0xf0] }
  0x25   : > { %1201 = vmatpush.bf16.msra.mxu1 %v1154_v12  ;;  %1202 = vmatpush.bf16.msra.mxu2 %v1154_v12 }
  0x26   : > { %649 = vmatpush.bf16.msra.mxu0 %v1154_v12  ;;  %736 = vmatpush.bf16.msra.mxu3 %v1178_v13  ;;  %v1147_v12 = vld [vmem:[%s1342_s22 + $0x70] sm:$0xf0]  ;;  %v1149_v13 = vld [vmem:[%s1342_s22 + $0x84] sm:$0xf] }
  0x27   : > { %v961_v15 = vor.u32 %v1147_v12, %v960_v10 }
  0x29   : > { %1203 = vmatpush.bf16.msra.mxu1 %v1153_v14  ;;  %1204 = vmatpush.bf16.msra.mxu2 %v1153_v14 }
  0x2a   : > { %650 = vmatpush.bf16.msra.mxu0 %v1153_v14  ;;  %737 = vmatpush.bf16.msra.mxu3 %v1177_v22  ;;  %v974_v14 = vld [vmem:[%s1342_s22 + $0x94] sm:$0xf0] }
  0x2b   : > { %v977_v16 = vor.u32 %v1149_v13, %v974_v14 }
  0x2c   : > { %656 = vmatmul.bf16.vlgmr.msra.gmra.mxu1 %v925_v23  ;;  %666 = vmatmul.bf16.vlgmr.msra.gmra.mxu2 %v965_v24  ;;  %v980_v23 = vld [vmem:[%s1342_s22 + $0x88] sm:$0xf]  ;;  %v1152_v24 = vld [vmem:[%s1342_s22 + $0x98] sm:$0xf0] }
  0x2d   : > { %701 = vmatpush.bf16.msrb.mxu2 %v1176_v19  ;;  %672 = vmatpush.bf16.msrb.mxu1 %v1168_v20  ;;  %v953_v19 = vor.u32 %v1146_v18, %v952_v17  ;;  %v1143_v20 = vld [vmem:[%s1342_s22 + $0x54] sm:$0xf]  ;;  %v981_v25 = vor.u32 %v1152_v24, %v980_v23 }
  0x2e   : > { %763 = vmatpush.bf16.msrb.mxu0 %v1188_v28  ;;  %738 = vmatmul.bf16.vlgmr.msra.gmra.mxu3 %v917_v32  ;;  %v949_v22 = vor.u32 %v1143_v20, %v946_v21  ;;  %v973_v28 = vor.u32 %v1151_v27, %v972_v26 }
  0x2f   : > { %651 = vmatmul.bf16.vlgmr.msra.gmra.mxu0 %v905_v31 }
  0x31   : > { %702 = vmatpush.bf16.msrb.mxu2 %v1175_v29  ;;  %673 = vmatpush.bf16.msrb.mxu1 %v1167_v30  ;;  %v1148_v29 = vld [vmem:[%s1342_s22 + $0x7c] sm:$0xf]  ;;  %v966_v30 = vld [vmem:[%s1342_s22 + $0x8c] sm:$0xf0]  ;;  %s1132_s22 = sshll.u32 %s1516_s12, 6 }
  0x32   : > { %764 = vmatpush.bf16.msrb.mxu0 %v1187_v33  ;;  %v969_v31 = vor.u32 %v1148_v29, %v966_v30  ;;  %s1472_s29 = scalar_lea.vmem %s1510_s3, %s1132_s22 }
  0x35   : > { %703 = vmatpush.bf16.msrb.mxu2 %v1174_v34  ;;  %674 = vmatpush.bf16.msrb.mxu1 %v1166_v35 }
  0x36   : > { %765 = vmatpush.bf16.msrb.mxu0 %v1186_v36 }
  0x39   : > { %704 = vmatpush.bf16.msrb.mxu2 %v1173_v37  ;;  %675 = vmatpush.bf16.msrb.mxu1 %v1165_v38 }
  0x3a   : > { %766 = vmatpush.bf16.msrb.mxu0 %v1185_v41 }
  0x3c   : > { %661 = vmatmul.bf16.gmra.mxu1 %v945_v45 }
  0x3d   : > { %705 = vmatpush.bf16.msrb.mxu2 %v1172_v42  ;;  %676 = vmatpush.bf16.msrb.mxu1 %v1164_v43  ;;  %v1464_v42 = vld [vmem:[%s1509_s2] ss:$0 sm:$0xff] }
  0x3e   : > { %743 = vmatmul.bf16.gmra.mxu3 %v937_v52 }
  0x3f   : > { %1126 = vmatmul.msk.bf16.vlgmr.msrb.gmra.mxu0 %vm630_vm0, %v921_v51 }
  0x41   : > { %706 = vmatpush.bf16.msrb.mxu2 %v1171_v49  ;;  %677 = vmatpush.bf16.msrb.mxu1 %v1163_v50 }
  0x45   : > { %707 = vmatpush.bf16.msrb.mxu2 %v1170_v53  ;;  %678 = vmatpush.bf16.msrb.mxu1 %v1162_v54 }
  0x49   : > { %708 = vmatpush.bf16.msrb.mxu2 %v1169_v55  ;;  %679 = vmatpush.bf16.msrb.mxu1 %v1161_v56 }
  0x4c   : > { %709 = vmatmul.bf16.vlgmr.msrb.gmra.mxu2 %v913_v59  ;;  %680 = vmatmul.bf16.vlgmr.msrb.gmra.mxu1 %v909_v63 }
  0x4e   : > { %748 = vmatmul.bf16.gmra.mxu3 %v957_v4 }
  0x4f   : > { %1127 = vmatmul.msk.bf16.gmra.mxu0 %vm630_vm0, %v941_v3 }
  0x5c   : > { %714 = vmatmul.bf16.gmra.mxu2 %v933_v7  ;;  %685 = vmatmul.bf16.gmra.mxu1 %v929_v11 }
  0x5e   : > { %753 = vmatmul.bf16.gmra.mxu3 %v977_v16 }
  0x5f   : > { %1128 = vmatmul.msk.bf16.gmra.mxu0 %vm630_vm0, %v961_v15 }
  0x6c   : > { %719 = vmatmul.bf16.gmra.mxu2 %v953_v19  ;;  %690 = vmatmul.bf16.gmra.mxu1 %v949_v22 }
  0x6f   : > { %1129 = vmatmul.msk.bf16.gmra.mxu0 %vm630_vm0, %v981_v25 }
  0x7c   : > { %724 = vmatmul.bf16.gmra.mxu2 %v973_v28  ;;  %695 = vmatmul.bf16.gmra.mxu1 %v969_v31 }
  0xa9   : > { %v657_v32 = vpop.f32.mrf.mxu1 }
  0xaa   : > { %v658_v61 = vadd.f32 %v1464_v42, %v657_v32 }
  0xac   : > { %v652_v33 = vpop.f32.mrf.mxu0 }
  0xad   : > { %v653_v43 = vadd.f32 %v1464_v42, %v652_v33 }
  0xaf   : > { %v1457_v37 = vpop.f32.mrf.mxu2 }
  0xb1   : > { %v659_v34 = vpop.f32.mrf.mxu1  ;;  %v739_v38 = vpop.f32.mrf.mxu3 }
  0xb2   : > { %v660_v6 = vadd.f32 %v1464_v42, %v659_v34 }
  0xb4   : > { %v654_v35 = vpop.f32.mrf.mxu0 }
  0xb5   : > { %v655_v51 = vadd.f32 %v1464_v42, %v654_v35  ;;  %v668_v35 = vadd.f32 %v1464_v42, %v1457_v37 }
  0xb7   : > { %v1459_v41 = vpop.f32.mrf.mxu2 }
  0xb9   : > { %v662_v36 = vpop.f32.mrf.mxu1  ;;  %v741_v46 = vpop.f32.mrf.mxu3 }
  0xba   : > { %v663_v15 = vadd.f32 %v1464_v42, %v662_v36 }
  0xbc   : > { %v768_v40 = vpop.f32.mrf.mxu0 }
  0xc1   : > { %v664_v39 = vpop.f32.mrf.mxu1  ;;  %v744_v57 = vpop.f32.mrf.mxu3 }
  0xc2   : > { %v665_v25 = vadd.f32 %v1464_v42, %v664_v39 }
  0xc4   : > { %v770_v48 = vpop.f32.mrf.mxu0 }
  0xc9   : > { %v681_v44 = vpop.f32.mrf.mxu1  ;;  %v746_v4 = vpop.f32.mrf.mxu3 }
  0xca   : > { %v682_v45 = vadd.f32 %v681_v44, %v653_v43 }
  0xcc   : > { %v773_v59 = vpop.f32.mrf.mxu0 }
  0xcf   : > { %v710_v47 = vpop.f32.mrf.mxu2 }
  0xd0   : > { %v711_v49 = vadd.f32 %v710_v47, %v682_v45 }
  0xd1   : > { %v683_v53 = vpop.f32.mrf.mxu1  ;;  %v749_v16 = vpop.f32.mrf.mxu3 }
  0xd2   : > { %v740_v50 = vadd.f32 %v739_v38, %v711_v49  ;;  %v684_v54 = vadd.f32 %v683_v53, %v655_v51 }
  0xd4   : > { %v769_v52 = vadd.f32 %v768_v40, %v740_v50  ;;  %v775_v7 = vpop.f32.mrf.mxu0 }
  0xd6   : > { %v788_v55 = vmax.f32 %v769_v52, 0.0 }
  0xd7   : > { %v712_v56 = vpop.f32.mrf.mxu2 }
  0xd8   : > { %796 = vst.msk [vmem:[%s1472_s29] sm:$0xff] %vm630_vm0, %v788_v55  ;;  %v713_v58 = vadd.f32 %v712_v56, %v684_v54 }
  0xd9   : > { %v686_v63 = vpop.f32.mrf.mxu1  ;;  %v751_v28 = vpop.f32.mrf.mxu3 }
  0xda   : > { %v742_v60 = vadd.f32 %v741_v46, %v713_v58  ;;  %v687_v0 = vadd.f32 %v686_v63, %v658_v61 }
  0xdc   : > { %v771_v62 = vadd.f32 %v770_v48, %v742_v60  ;;  %v778_v19 = vpop.f32.mrf.mxu0  ;;  %v670_v48 = vadd.f32 %v1464_v42, %v1459_v41 }
  0xde   : > { %v789_v1 = vmax.f32 %v771_v62, 0.0 }
  0xdf   : > { %v715_v2 = vpop.f32.mrf.mxu2 }
  0xe0   : > { %797 = vst.msk [vmem:[%s1472_s29 + $0x8] sm:$0xff] %vm630_vm0, %v789_v1  ;;  %v716_v3 = vadd.f32 %v715_v2, %v687_v0 }
  0xe1   : > { %v688_v9 = vpop.f32.mrf.mxu1  ;;  %v754_v43 = vpop.f32.mrf.mxu3 }
  0xe2   : > { %v745_v5 = vadd.f32 %v744_v57, %v716_v3  ;;  %v689_v10 = vadd.f32 %v688_v9, %v660_v6 }
  0xe4   : > { %v774_v8 = vadd.f32 %v773_v59, %v745_v5  ;;  %v780_v31 = vpop.f32.mrf.mxu0 }
  0xe6   : > { %v790_v11 = vmax.f32 %v774_v8, 0.0 }
  0xe7   : > { %v717_v12 = vpop.f32.mrf.mxu2 }
  0xe8   : > { %798 = vst.msk [vmem:[%s1472_s29 + $0x10] sm:$0xff] %vm630_vm0, %v790_v11  ;;  %v718_v13 = vadd.f32 %v717_v12, %v689_v10 }
  0xe9   : > { %v691_v18 = vpop.f32.mrf.mxu1  ;;  %v756_v54 = vpop.f32.mrf.mxu3 }
  0xea   : > { %v747_v14 = vadd.f32 %v746_v4, %v718_v13  ;;  %v692_v20 = vadd.f32 %v691_v18, %v663_v15 }
  0xec   : > { %v776_v17 = vadd.f32 %v775_v7, %v747_v14  ;;  %v783_v46 = vpop.f32.mrf.mxu0 }
  0xee   : > { %v791_v21 = vmax.f32 %v776_v17, 0.0 }
  0xef   : > { %v720_v22 = vpop.f32.mrf.mxu2 }
  0xf0   : > { %799 = vst.msk [vmem:[%s1472_s29 + $0x18] sm:$0xff] %vm630_vm0, %v791_v21  ;;  %v721_v23 = vadd.f32 %v720_v22, %v692_v20 }
  0xf1   : > { %v693_v27 = vpop.f32.mrf.mxu1 }
  0xf2   : > { %v750_v24 = vadd.f32 %v749_v16, %v721_v23  ;;  %v694_v29 = vadd.f32 %v693_v27, %v665_v25 }
  0xf4   : > { %v779_v26 = vadd.f32 %v778_v19, %v750_v24  ;;  %v785_v56 = vpop.f32.mrf.mxu0 }
  0xf6   : > { %v792_v30 = vmax.f32 %v779_v26, 0.0 }
  0xf7   : > { %v722_v32 = vpop.f32.mrf.mxu2 }
  0xf8   : > { %800 = vst.msk [vmem:[%s1472_s29 + $0x20] sm:$0xff] %vm630_vm0, %v792_v30  ;;  %v723_v33 = vadd.f32 %v722_v32, %v694_v29 }
  0xf9   : > { %v696_v38 = vpop.f32.mrf.mxu1 }
  0xfa   : > { %v752_v34 = vadd.f32 %v751_v28, %v723_v33  ;;  %v697_v40 = vadd.f32 %v696_v38, %v668_v35 }
  0xfc   : > { %v781_v36 = vadd.f32 %v780_v31, %v752_v34 }
  0xfe   : > { %v793_v39 = vmax.f32 %v781_v36, 0.0 }
  0xff   : > { %v725_v44 = vpop.f32.mrf.mxu2 }
 0x100   : > { %801 = vst.msk [vmem:[%s1472_s29 + $0x28] sm:$0xff] %vm630_vm0, %v793_v39  ;;  %v726_v45 = vadd.f32 %v725_v44, %v697_v40 }
 0x101   : > { %v698_v50 = vpop.f32.mrf.mxu1 }
 0x102   : > { %v755_v47 = vadd.f32 %v754_v43, %v726_v45  ;;  %v699_v51 = vadd.f32 %v698_v50, %v670_v48 }
 0x104   : > { %v784_v49 = vadd.f32 %v783_v46, %v755_v47 }
 0x106   : > { %v794_v37 = vmax.f32 %v784_v49, 0.0 }
 0x107   : > { %v727_v52 = vpop.f32.mrf.mxu2 }
 0x108   : > { %802 = vst.msk [vmem:[%s1472_s29 + $0x30] sm:$0xff] %vm630_vm0, %v794_v37  ;;  %v728_v53 = vadd.f32 %v727_v52, %v699_v51 }
 0x10a   : > { %v757_v55 = vadd.f32 %v756_v54, %v728_v53 }
 0x10c   : > { %v786_v57 = vadd.f32 %v785_v56, %v757_v55 }
 0x10e   : > { %v795_v58 = vmax.f32 %v786_v57, 0.0 }
 0x110   : > { %803 = vst.msk [vmem:[%s1472_s29 + $0x38] sm:$0xff] %vm630_vm0, %v795_v58 }
 0x111 PF: > { %s13_s14 = sadd.s32 1, %s1253_s14   ;;  %s1511_s12 = smov %s1249_s13 }
 0x112   : > { %p10_p5 = scmp.ge.s32.totalorder %s13_s14, 4   ;;  %s1512_s13 = smov %s1514_s15 }
 0x114   :  { %12 = sbr.rel (!%p10_p5) target bundleno = 2 (0x2), region = 62 }

// kernel: forward.9
= control target key start
LH: loop header
LB: loop body
LE: loop exit
PB: predicated region body
PF: predicated region fallthrough
CT: control target
= control target key end

     0   :  { %s2048_s18 = smov 0   ;;  %s2050_s19 = smov 0   ;;  %s2760_s0 = inlined_call_operand.vmem [shape: bf16[2,64,576], index: 0, kind: input, shape index: {}]   ;;  %s2761_s1 = inlined_call_operand.vmem [shape: bf16[576,192], index: 1, kind: input, shape index: {}]   ;;  %s2762_s2 = inlined_call_operand.vmem [shape: f32[1,192], index: 2, kind: input, shape index: {}]   ;;  %s2763_s3 = inlined_call_operand.vmem [shape: bf16[192,128], index: 3, kind: input, shape index: {}]   ;;  %s2764_s4 = inlined_call_operand.vmem [shape: f32[1,128], index: 4, kind: input, shape index: {}]   ;;  %s2765_s5 = inlined_call_operand.vmem [shape: f32[2,64,128], index: 5, kind: output, shape index: {}]  }
   0x1   :  { %s2052_s20 = smov 0  }
   0x2 LB: > { %s27_s21 = sadd.s32 1, %s2012_s19  ;;  %p1429_p0 = scmp.ge.s32.totalorder %s2016_s20, 1  ;;  %s2016_s20 = sphi %s2052_s20, %s15_s20   ;;  %s2012_s19 = sphi %s2050_s19, %s2767_s19   ;;  %s2008_s18 = sphi %s2048_s18, %s2766_s18  }
   0x3   : > { %p29_p1 = scmp.ge.s32.totalorder %s27_s21, 2  ;;  %p209_p2 = scmp.lt.s32.totalorder %s2016_s20, 3 }
   0x5   : > { %s2769_s21 = smov (%p29_p1, %s27_s21), 0  ;;  %p210_p3 = pnand %p1429_p0, %p209_p2 }
   0x6   : > { %p247_p4 = scmp.lt.s32.totalorder (!%p210_p3), %s2008_s18, 1 }
   0x7   : > { %213 = sbr.rel (%p210_p3) target bundleno = 507 (0x1fb), region = 40 }
   0xc   : > { %v1571_v0 = vld [vmem:[%s2761_s1 + $0x70] sm:$0xf]  ;;  %v1899_v1 = vld [vmem:[%s2761_s1 + $0x74] sm:$0xf0]  ;;  %v1563_v11 = vld [vmem:[%s2761_s1 + $0x60] sm:$0xf] }
   0xd   : > { %v1635_v2 = vld [vmem:[%s2761_s1 + $0xf0] sm:$0xf]  ;;  %v1572_v3 = vor.u32 %v1899_v1, %v1571_v0  ;;  %v1915_v4 = vld [vmem:[%s2761_s1 + $0xf4] sm:$0xf0]  ;;  %v1897_v13 = vld [vmem:[%s2761_s1 + $0x64] sm:$0xf0] }
   0xe   : > { %v1699_v5 = vld [vmem:[%s2761_s1 + $0x170] sm:$0xf]  ;;  %v1931_v6 = vld [vmem:[%s2761_s1 + $0x174] sm:$0xf0]  ;;  %v1636_v7 = vor.u32 %v1915_v4, %v1635_v2  ;;  %v1627_v14 = vld [vmem:[%s2761_s1 + $0xe0] sm:$0xf]  ;;  %v1564_v16 = vor.u32 %v1897_v13, %v1563_v11 }
   0xf   : > { %v1700_v8 = vor.u32 %v1931_v6, %v1699_v5  ;;  %v1763_v9 = vld [vmem:[%s2761_s1 + $0x1f0] sm:$0xf]  ;;  %v1947_v10 = vld [vmem:[%s2761_s1 + $0x1f4] sm:$0xf0]  ;;  %843 = vmatpush.bf16.msra.mxu0 %v1572_v3  ;;  %v1913_v15 = vld [vmem:[%s2761_s1 + $0xe4] sm:$0xf0] }
  0x10   : > { %v1764_v12 = vor.u32 %v1947_v10, %v1763_v9  ;;  %872 = vmatpush.bf16.msra.mxu1 %v1636_v7  ;;  %v1628_v17 = vor.u32 %v1913_v15, %v1627_v14  ;;  %v1691_v18 = vld [vmem:[%s2761_s1 + $0x160] sm:$0xf]  ;;  %v1929_v19 = vld [vmem:[%s2761_s1 + $0x164] sm:$0xf0]  ;;  %v1555_v23 = vld [vmem:[%s2761_s1 + $0x50] sm:$0xf] }
  0x11   : > { %901 = vmatpush.bf16.msra.mxu2 %v1700_v8  ;;  %v1755_v20 = vld [vmem:[%s2761_s1 + $0x1e0] sm:$0xf]  ;;  %v1692_v21 = vor.u32 %v1929_v19, %v1691_v18  ;;  %v1945_v22 = vld [vmem:[%s2761_s1 + $0x1e4] sm:$0xf0]  ;;  %v1895_v24 = vld [vmem:[%s2761_s1 + $0x54] sm:$0xf0] }
  0x12   : > { %930 = vmatpush.bf16.msra.mxu3 %v1764_v12  ;;  %v1756_v25 = vor.u32 %v1945_v22, %v1755_v20  ;;  %v1619_v26 = vld [vmem:[%s2761_s1 + $0xd0] sm:$0xf]  ;;  %v1911_v27 = vld [vmem:[%s2761_s1 + $0xd4] sm:$0xf0]  ;;  %v1556_v29 = vor.u32 %v1895_v24, %v1555_v23  ;;  %v1547_v35 = vld [vmem:[%s2761_s1 + $0x40] sm:$0xf] }
  0x13   : > { %v1683_v28 = vld [vmem:[%s2761_s1 + $0x150] sm:$0xf]  ;;  %844 = vmatpush.bf16.msra.mxu0 %v1564_v16  ;;  %v1927_v30 = vld [vmem:[%s2761_s1 + $0x154] sm:$0xf0]  ;;  %v1620_v33 = vor.u32 %v1911_v27, %v1619_v26  ;;  %v1893_v36 = vld [vmem:[%s2761_s1 + $0x44] sm:$0xf0] }
  0x14   : > { %v1747_v31 = vld [vmem:[%s2761_s1 + $0x1d0] sm:$0xf]  ;;  %v1943_v32 = vld [vmem:[%s2761_s1 + $0x1d4] sm:$0xf0]  ;;  %873 = vmatpush.bf16.msra.mxu1 %v1628_v17  ;;  %v1684_v34 = vor.u32 %v1927_v30, %v1683_v28  ;;  %v1611_v37 = vld [vmem:[%s2761_s1 + $0xc0] sm:$0xf]  ;;  %v1548_v44 = vor.u32 %v1893_v36, %v1547_v35 }
  0x15   : > { %902 = vmatpush.bf16.msra.mxu2 %v1692_v21  ;;  %v1748_v38 = vor.u32 %v1943_v32, %v1747_v31  ;;  %v1909_v39 = vld [vmem:[%s2761_s1 + $0xc4] sm:$0xf0]  ;;  %v1675_v40 = vld [vmem:[%s2761_s1 + $0x140] sm:$0xf]  ;;  %v1539_v47 = vld [vmem:[%s2761_s1 + $0x30] sm:$0xf] }
  0x16   : > { %931 = vmatpush.bf16.msra.mxu3 %v1756_v25  ;;  %v1925_v41 = vld [vmem:[%s2761_s1 + $0x144] sm:$0xf0]  ;;  %v1739_v42 = vld [vmem:[%s2761_s1 + $0x1c0] sm:$0xf]  ;;  %v1612_v45 = vor.u32 %v1909_v39, %v1611_v37  ;;  %v1891_v48 = vld [vmem:[%s2761_s1 + $0x34] sm:$0xf0] }
  0x17   : > { %v1941_v43 = vld [vmem:[%s2761_s1 + $0x1c4] sm:$0xf0]  ;;  %845 = vmatpush.bf16.msra.mxu0 %v1556_v29  ;;  %v1676_v46 = vor.u32 %v1925_v41, %v1675_v40  ;;  %v1603_v49 = vld [vmem:[%s2761_s1 + $0xb0] sm:$0xf]  ;;  %v1907_v51 = vld [vmem:[%s2761_s1 + $0xb4] sm:$0xf0]  ;;  %v1540_v56 = vor.u32 %v1891_v48, %v1539_v47 }
  0x18   : > { %874 = vmatpush.bf16.msra.mxu1 %v1620_v33  ;;  %v1740_v50 = vor.u32 %v1941_v43, %v1739_v42  ;;  %v1667_v52 = vld [vmem:[%s2761_s1 + $0x130] sm:$0xf]  ;;  %v1923_v53 = vld [vmem:[%s2761_s1 + $0x134] sm:$0xf0]  ;;  %v1604_v57 = vor.u32 %v1907_v51, %v1603_v49  ;;  %v1531_v59 = vld [vmem:[%s2761_s1 + $0x20] sm:$0xf] }
  0x19   : > { %903 = vmatpush.bf16.msra.mxu2 %v1684_v34  ;;  %v1731_v54 = vld [vmem:[%s2761_s1 + $0x1b0] sm:$0xf]  ;;  %v1939_v55 = vld [vmem:[%s2761_s1 + $0x1b4] sm:$0xf0]  ;;  %v1668_v58 = vor.u32 %v1923_v53, %v1667_v52  ;;  %v1889_v60 = vld [vmem:[%s2761_s1 + $0x24] sm:$0xf0] }
  0x1a   : > { %932 = vmatpush.bf16.msra.mxu3 %v1748_v38  ;;  %v1595_v61 = vld [vmem:[%s2761_s1 + $0xa0] sm:$0xf]  ;;  %v1732_v62 = vor.u32 %v1939_v55, %v1731_v54  ;;  %v1905_v63 = vld [vmem:[%s2761_s1 + $0xa4] sm:$0xf0]  ;;  %v1532_v4 = vor.u32 %v1889_v60, %v1531_v59  ;;  %v1523_v5 = vld [vmem:[%s2761_s1 + $0x10] sm:$0xf] }
  0x1b   : > { %846 = vmatpush.bf16.msra.mxu0 %v1548_v44  ;;  %v1659_v0 = vld [vmem:[%s2761_s1 + $0x120] sm:$0xf]  ;;  %v1921_v1 = vld [vmem:[%s2761_s1 + $0x124] sm:$0xf0]  ;;  %v1596_v6 = vor.u32 %v1905_v63, %v1595_v61  ;;  %v1887_v8 = vld [vmem:[%s2761_s1 + $0x14] sm:$0xf0] }
  0x1c   : > { %875 = vmatpush.bf16.msra.mxu1 %v1612_v45  ;;  %v1723_v2 = vld [vmem:[%s2761_s1 + $0x1a0] sm:$0xf]  ;;  %v1937_v3 = vld [vmem:[%s2761_s1 + $0x1a4] sm:$0xf0]  ;;  %v1660_v7 = vor.u32 %v1921_v1, %v1659_v0  ;;  %v1587_v9 = vld [vmem:[%s2761_s1 + $0x90] sm:$0xf]  ;;  %v1524_v17 = vor.u32 %v1887_v8, %v1523_v5 }
  0x1d   : > { %904 = vmatpush.bf16.msra.mxu2 %v1676_v46  ;;  %v1903_v10 = vld [vmem:[%s2761_s1 + $0x94] sm:$0xf0]  ;;  %v1724_v11 = vor.u32 %v1937_v3, %v1723_v2  ;;  %v1651_v12 = vld [vmem:[%s2761_s1 + $0x110] sm:$0xf]  ;;  %v1515_v16 = vld [vmem:[%s2761_s1] sm:$0xf] }
  0x1e   : > { %933 = vmatpush.bf16.msra.mxu3 %v1740_v50  ;;  %v1919_v13 = vld [vmem:[%s2761_s1 + $0x114] sm:$0xf0]  ;;  %v1715_v14 = vld [vmem:[%s2761_s1 + $0x190] sm:$0xf]  ;;  %v1885_v18 = vld [vmem:[%s2761_s1 + $0x4] sm:$0xf0]  ;;  %v1588_v20 = vor.u32 %v1903_v10, %v1587_v9 }
  0x1f   : > { %847 = vmatpush.bf16.msra.mxu0 %v1540_v56  ;;  %v1935_v15 = vld [vmem:[%s2761_s1 + $0x194] sm:$0xf0]  ;;  %v1579_v19 = vld [vmem:[%s2761_s1 + $0x80] sm:$0xf]  ;;  %s2771_s18 = smov (!%p247_p4, %s2008_s18), 1  ;;  %v1652_v21 = vor.u32 %v1919_v13, %v1651_v12  ;;  %v1516_v30 = vor.u32 %v1885_v18, %v1515_v16  ;;  %vm830_vm0 = vcmask 523264  }
  0x20   : > { %876 = vmatpush.bf16.msra.mxu1 %v1604_v57  ;;  %v1901_v22 = vld [vmem:[%s2761_s1 + $0x84] sm:$0xf0]  ;;  %v1643_v23 = vld [vmem:[%s2761_s1 + $0x100] sm:$0xf]  ;;  %v1716_v25 = vor.u32 %v1935_v15, %v1715_v14  ;;  %s1968_s24 = smul.u32 160, %s2771_s18  ;;  %s1863_s9 = sshll.u32 %s2771_s18, 6 }
  0x21   : > { %905 = vmatpush.bf16.msra.mxu2 %v1668_v58  ;;  %v1917_v24 = vld [vmem:[%s2761_s1 + $0x104] sm:$0xf0]  ;;  %v1707_v26 = vld [vmem:[%s2761_s1 + $0x180] sm:$0xf]  ;;  %v1795_v28 = vld [vmem:[%s2761_s1 + $0x230] sm:$0xf]  ;;  %v1580_v33 = vor.u32 %v1901_v22, %v1579_v19  ;;  %s2741_s12 = scalar_lea.vmem %s2765_s5, %s1863_s9 }
  0x22   : > { %934 = vmatpush.bf16.msra.mxu3 %v1732_v62  ;;  %v1933_v27 = vld [vmem:[%s2761_s1 + $0x184] sm:$0xf0]  ;;  %v1955_v29 = vld [vmem:[%s2761_s1 + $0x234] sm:$0xf0]  ;;  %s2274_s6 = scalar_lea.vmem %s2760_s0, %s1968_s24  ;;  %v1898_v31 = vld [vmem:[%s2761_s1 + $0x74] sm:$0xf]  ;;  %v1644_v34 = vor.u32 %v1917_v24, %v1643_v23 }
  0x23   : > { %848 = vmatpush.bf16.msra.mxu0 %v1532_v4  ;;  %v1573_v32 = vld [vmem:[%s2761_s1 + $0x78] sm:$0xf0]  ;;  %v1435_v35 = vld [vmem:[%s2274_s6] sm:$0xf]  ;;  %v1866_v36 = vld [vmem:[%s2274_s6 + $0x10] sm:$0xf0]  ;;  %v1708_v39 = vor.u32 %v1933_v27, %v1707_v26  ;;  %v1796_v43 = vor.u32 %v1955_v29, %v1795_v28 }
  0x24   : > { %877 = vmatpush.bf16.msra.mxu1 %v1596_v6  ;;  %v1864_v37 = vld [vmem:[%s2274_s6 + $0x4] sm:$0xf]  ;;  %v1787_v38 = vld [vmem:[%s2761_s1 + $0x220] sm:$0xf]  ;;  %v1437_v40 = vld [vmem:[%s2274_s6 + $0x14] sm:$0xf0]  ;;  %v2291_v44 = vor.u32 %v1866_v36, %v1435_v35  ;;  %v1576_v47 = vor.u32 %v1898_v31, %v1573_v32 }
  0x25   : > { %906 = vmatpush.bf16.msra.mxu2 %v1660_v7  ;;  %v1443_v41 = vld [vmem:[%s2274_s6 + $0x8] sm:$0xf]  ;;  %v1867_v42 = vld [vmem:[%s2274_s6 + $0x18] sm:$0xf0]  ;;  %v1865_v45 = vld [vmem:[%s2274_s6 + $0xc] sm:$0xf]  ;;  %v2298_v49 = vor.u32 %v1864_v37, %v1437_v40 }
  0x26   : > { %935 = vmatpush.bf16.msra.mxu3 %v1724_v11  ;;  %v1445_v46 = vld [vmem:[%s2274_s6 + $0x1c] sm:$0xf0]  ;;  %v1953_v48 = vld [vmem:[%s2761_s1 + $0x224] sm:$0xf0]  ;;  %v2300_v50 = vor.u32 %v1867_v42, %v1443_v41  ;;  %v1896_v51 = vld [vmem:[%s2761_s1 + $0x64] sm:$0xf] }
  0x27   : > { %849 = vmatpush.bf16.msra.mxu0 %v1524_v17  ;;  %v1565_v52 = vld [vmem:[%s2761_s1 + $0x68] sm:$0xf0]  ;;  %v2308_v53 = vor.u32 %v1865_v45, %v1445_v46  ;;  %v1788_v54 = vor.u32 %v1953_v48, %v1787_v38  ;;  %v1894_v56 = vld [vmem:[%s2761_s1 + $0x54] sm:$0xf]  ;;  %v1557_v57 = vld [vmem:[%s2761_s1 + $0x58] sm:$0xf0] }
  0x28   : > { %878 = vmatpush.bf16.msra.mxu1 %v1588_v20  ;;  %v1568_v55 = vor.u32 %v1896_v51, %v1565_v52  ;;  %v1779_v58 = vld [vmem:[%s2761_s1 + $0x210] sm:$0xf]  ;;  %v1951_v59 = vld [vmem:[%s2761_s1 + $0x214] sm:$0xf0]  ;;  %v1914_v60 = vld [vmem:[%s2761_s1 + $0xf4] sm:$0xf]  ;;  %v1560_v2 = vor.u32 %v1894_v56, %v1557_v57 }
  0x29   : > { %907 = vmatpush.bf16.msra.mxu2 %v1652_v21  ;;  %v1637_v61 = vld [vmem:[%s2761_s1 + $0xf8] sm:$0xf0]  ;;  %v1892_v62 = vld [vmem:[%s2761_s1 + $0x44] sm:$0xf]  ;;  %v1549_v63 = vld [vmem:[%s2761_s1 + $0x48] sm:$0xf0]  ;;  %v1780_v0 = vor.u32 %v1951_v59, %v1779_v58 }
  0x2a   : > { %936 = vmatpush.bf16.msra.mxu3 %v1716_v25  ;;  %v1640_v1 = vor.u32 %v1914_v60, %v1637_v61  ;;  %v1930_v3 = vld [vmem:[%s2761_s1 + $0x174] sm:$0xf]  ;;  %v1701_v4 = vld [vmem:[%s2761_s1 + $0x178] sm:$0xf0]  ;;  %v1912_v5 = vld [vmem:[%s2761_s1 + $0xe4] sm:$0xf]  ;;  %v1552_v17 = vor.u32 %v1892_v62, %v1549_v63 }
  0x2b   : > { %850 = vmatpush.bf16.msra.mxu0 %v1516_v30  ;;  %v1704_v6 = vor.u32 %v1930_v3, %v1701_v4  ;;  %v1629_v7 = vld [vmem:[%s2761_s1 + $0xe8] sm:$0xf0]  ;;  %v1928_v8 = vld [vmem:[%s2761_s1 + $0x164] sm:$0xf]  ;;  %v1910_v11 = vld [vmem:[%s2761_s1 + $0xd4] sm:$0xf] }
  0x2c   : > { %879 = vmatpush.bf16.msra.mxu1 %v1580_v33  ;;  %v1693_v9 = vld [vmem:[%s2761_s1 + $0x168] sm:$0xf0]  ;;  %v1632_v10 = vor.u32 %v1912_v5, %v1629_v7  ;;  %v1621_v12 = vld [vmem:[%s2761_s1 + $0xd8] sm:$0xf0]  ;;  %v1455_v13 = vld [vmem:[%s2274_s6 + $0x28] sm:$0xf] }
  0x2d   : > { %908 = vmatpush.bf16.msra.mxu2 %v1644_v34  ;;  %v1871_v14 = vld [vmem:[%s2274_s6 + $0x38] sm:$0xf0]  ;;  %v1696_v15 = vor.u32 %v1928_v8, %v1693_v9  ;;  %v1869_v16 = vld [vmem:[%s2274_s6 + $0x2c] sm:$0xf]  ;;  %v1926_v18 = vld [vmem:[%s2761_s1 + $0x154] sm:$0xf]  ;;  %v1624_v23 = vor.u32 %v1910_v11, %v1621_v12 }
  0x2e   : > { %937 = vmatpush.bf16.msra.mxu3 %v1708_v39  ;;  %851 = vmatmul.bf16.vlgmr.msra.gmra.mxu0 %v2291_v44  ;;  %v1685_v19 = vld [vmem:[%s2761_s1 + $0x158] sm:$0xf0]  ;;  %v1457_v20 = vld [vmem:[%s2274_s6 + $0x3c] sm:$0xf0]  ;;  %v1890_v21 = vld [vmem:[%s2761_s1 + $0x34] sm:$0xf]  ;;  %v2388_v31 = vor.u32 %v1871_v14, %v1455_v13 }
  0x2f   : > { %963 = vmatpush.bf16.msrb.mxu0 %v1796_v43  ;;  %880 = vmatmul.bf16.vlgmr.msra.gmra.mxu1 %v2298_v49  ;;  %v1541_v22 = vld [vmem:[%s2761_s1 + $0x38] sm:$0xf0]  ;;  %v1463_v24 = vld [vmem:[%s2274_s6 + $0x30] sm:$0xf]  ;;  %v1872_v25 = vld [vmem:[%s2274_s6 + $0x40] sm:$0xf0]  ;;  %v1688_v28 = vor.u32 %v1926_v18, %v1685_v19  ;;  %v2396_v35 = vor.u32 %v1869_v16, %v1457_v20 }
  0x30   : > { %988 = vmatpush.bf16.msrb.mxu1 %v1576_v47  ;;  %909 = vmatmul.bf16.vlgmr.msra.gmra.mxu2 %v2300_v50  ;;  %v1870_v26 = vld [vmem:[%s2274_s6 + $0x34] sm:$0xf]  ;;  %v1465_v27 = vld [vmem:[%s2274_s6 + $0x44] sm:$0xf0]  ;;  %v1908_v29 = vld [vmem:[%s2761_s1 + $0xc4] sm:$0xf]  ;;  %v1544_v32 = vor.u32 %v1890_v21, %v1541_v22  ;;  %v2398_v36 = vor.u32 %v1872_v25, %v1463_v24 }
  0x31   : > { %938 = vmatmul.bf16.vlgmr.msra.gmra.mxu3 %v2308_v53  ;;  %1017 = vmatpush.bf16.msrb.mxu2 %v1640_v1  ;;  %v1613_v30 = vld [vmem:[%s2761_s1 + $0xc8] sm:$0xf0]  ;;  %v1924_v33 = vld [vmem:[%s2761_s1 + $0x144] sm:$0xf]  ;;  %v2406_v39 = vor.u32 %v1870_v26, %v1465_v27  ;;  %v1906_v42 = vld [vmem:[%s2761_s1 + $0xb4] sm:$0xf] }
  0x32   : > { %1046 = vmatpush.bf16.msrb.mxu3 %v1704_v6  ;;  %v1677_v34 = vld [vmem:[%s2761_s1 + $0x148] sm:$0xf0]  ;;  %v1888_v37 = vld [vmem:[%s2761_s1 + $0x24] sm:$0xf]  ;;  %v1616_v40 = vor.u32 %v1908_v29, %v1613_v30  ;;  %v1605_v43 = vld [vmem:[%s2761_s1 + $0xb8] sm:$0xf0] }
  0x33   : > { %964 = vmatpush.bf16.msrb.mxu0 %v1788_v54  ;;  %v1533_v38 = vld [vmem:[%s2761_s1 + $0x28] sm:$0xf0]  ;;  %v1680_v41 = vor.u32 %v1924_v33, %v1677_v34  ;;  %v1771_v46 = vld [vmem:[%s2761_s1 + $0x200] sm:$0xf]  ;;  %v1949_v47 = vld [vmem:[%s2761_s1 + $0x204] sm:$0xf0]  ;;  %v1608_v52 = vor.u32 %v1906_v42, %v1605_v43 }
  0x34   : > { %989 = vmatpush.bf16.msrb.mxu1 %v1568_v55  ;;  %v1536_v45 = vor.u32 %v1888_v37, %v1533_v38  ;;  %v1922_v48 = vld [vmem:[%s2761_s1 + $0x134] sm:$0xf]  ;;  %v1772_v51 = vor.u32 %v1949_v47, %v1771_v46  ;;  %v1525_v55 = vld [vmem:[%s2761_s1 + $0x18] sm:$0xf0]  ;;  %v1904_v58 = vld [vmem:[%s2761_s1 + $0xa4] sm:$0xf] }
  0x35   : > { %1018 = vmatpush.bf16.msrb.mxu2 %v1632_v10  ;;  %v1886_v54 = vld [vmem:[%s2761_s1 + $0x14] sm:$0xf]  ;;  %v1669_v56 = vld [vmem:[%s2761_s1 + $0x138] sm:$0xf0]  ;;  %v1597_v59 = vld [vmem:[%s2761_s1 + $0xa8] sm:$0xf0] }
  0x36   : > { %1047 = vmatpush.bf16.msrb.mxu3 %v1696_v15  ;;  %v1672_v57 = vor.u32 %v1922_v48, %v1669_v56  ;;  %v1528_v60 = vor.u32 %v1886_v54, %v1525_v55  ;;  %v1920_v61 = vld [vmem:[%s2761_s1 + $0x124] sm:$0xf]  ;;  %v1661_v62 = vld [vmem:[%s2761_s1 + $0x128] sm:$0xf0]  ;;  %v1600_v1 = vor.u32 %v1904_v58, %v1597_v59  ;;  %v1902_v3 = vld [vmem:[%s2761_s1 + $0x94] sm:$0xf] }
  0x37   : > { %965 = vmatpush.bf16.msrb.mxu0 %v1780_v0  ;;  %v1884_v63 = vld [vmem:[%s2761_s1 + $0x4] sm:$0xf]  ;;  %v1517_v0 = vld [vmem:[%s2761_s1 + $0x8] sm:$0xf0]  ;;  %v1589_v4 = vld [vmem:[%s2761_s1 + $0x98] sm:$0xf0] }
  0x38   : > { %990 = vmatpush.bf16.msrb.mxu1 %v1560_v2  ;;  %v1664_v2 = vor.u32 %v1920_v61, %v1661_v62  ;;  %v1475_v5 = vld [vmem:[%s2274_s6 + $0x50] sm:$0xf]  ;;  %v1520_v6 = vor.u32 %v1884_v63, %v1517_v0  ;;  %v1918_v7 = vld [vmem:[%s2761_s1 + $0x114] sm:$0xf]  ;;  %v1653_v8 = vld [vmem:[%s2761_s1 + $0x118] sm:$0xf0]  ;;  %v1592_v15 = vor.u32 %v1902_v3, %v1589_v4 }
  0x39   : > { %1019 = vmatpush.bf16.msrb.mxu2 %v1624_v23  ;;  %v1876_v9 = vld [vmem:[%s2274_s6 + $0x60] sm:$0xf0]  ;;  %v1874_v10 = vld [vmem:[%s2274_s6 + $0x54] sm:$0xf]  ;;  %v1477_v11 = vld [vmem:[%s2274_s6 + $0x64] sm:$0xf0] }
  0x3a   : > { %1048 = vmatpush.bf16.msrb.mxu3 %v1688_v28  ;;  %v1483_v12 = vld [vmem:[%s2274_s6 + $0x58] sm:$0xf]  ;;  %v1877_v13 = vld [vmem:[%s2274_s6 + $0x68] sm:$0xf0]  ;;  %v1875_v14 = vld [vmem:[%s2274_s6 + $0x5c] sm:$0xf]  ;;  %v2480_v20 = vor.u32 %v1876_v9, %v1475_v5  ;;  %v2488_v23 = vor.u32 %v1874_v10, %v1477_v11 }
  0x3b   : > { %966 = vmatpush.bf16.msrb.mxu0 %v1772_v51  ;;  %v1485_v16 = vld [vmem:[%s2274_s6 + $0x6c] sm:$0xf0]  ;;  %v1900_v18 = vld [vmem:[%s2761_s1 + $0x84] sm:$0xf]  ;;  %v1581_v19 = vld [vmem:[%s2761_s1 + $0x88] sm:$0xf0]  ;;  %v2490_v24 = vor.u32 %v1877_v13, %v1483_v12 }
  0x3c   : > { %991 = vmatpush.bf16.msrb.mxu1 %v1552_v17  ;;  %v1656_v17 = vor.u32 %v1918_v7, %v1653_v8  ;;  %v1916_v21 = vld [vmem:[%s2761_s1 + $0x104] sm:$0xf]  ;;  %v1645_v22 = vld [vmem:[%s2761_s1 + $0x108] sm:$0xf0]  ;;  %v2492_v25 = vor.u32 %v1875_v14, %v1485_v16  ;;  %v1584_v26 = vor.u32 %v1900_v18, %v1581_v19  ;;  %v1946_v28 = vld [vmem:[%s2761_s1 + $0x1f4] sm:$0xf] }
  0x3d   : > { %1020 = vmatpush.bf16.msrb.mxu2 %v1616_v40  ;;  %v1648_v27 = vor.u32 %v1916_v21, %v1645_v22  ;;  %v1765_v29 = vld [vmem:[%s2761_s1 + $0x1f8] sm:$0xf0]  ;;  %v1944_v34 = vld [vmem:[%s2761_s1 + $0x1e4] sm:$0xf]  ;;  %v1757_v38 = vld [vmem:[%s2761_s1 + $0x1e8] sm:$0xf0] }
  0x3e   : > { %856 = vmatmul.bf16.gmra.mxu0 %v2388_v31  ;;  %1049 = vmatpush.bf16.msrb.mxu3 %v1680_v41  ;;  %v1768_v30 = vor.u32 %v1946_v28, %v1765_v29  ;;  %v1797_v33 = vld [vmem:[%s2761_s1 + $0x238] sm:$0xf0]  ;;  %v1760_v40 = vor.u32 %v1944_v34, %v1757_v38  ;;  %v1495_v41 = vld [vmem:[%s2274_s6 + $0x78] sm:$0xf]  ;;  %v1881_v42 = vld [vmem:[%s2274_s6 + $0x88] sm:$0xf0] }
  0x3f   : > { %885 = vmatmul.bf16.gmra.mxu1 %v2396_v35  ;;  %v1879_v43 = vld [vmem:[%s2274_s6 + $0x7c] sm:$0xf]  ;;  %v1503_v46 = vld [vmem:[%s2274_s6 + $0x80] sm:$0xf]  ;;  %v1882_v47 = vld [vmem:[%s2274_s6 + $0x90] sm:$0xf0] }
  0x40   : > { %992 = vmatpush.bf16.msrb.mxu1 %v1544_v32  ;;  %914 = vmatmul.bf16.gmra.mxu2 %v2398_v36  ;;  %v1954_v32 = vld [vmem:[%s2761_s1 + $0x234] sm:$0xf]  ;;  %v1880_v48 = vld [vmem:[%s2274_s6 + $0x84] sm:$0xf]  ;;  %v1505_v51 = vld [vmem:[%s2274_s6 + $0x94] sm:$0xf0]  ;;  %v2528_v55 = vor.u32 %v1882_v47, %v1503_v46 }
  0x41   : > { %943 = vmatmul.bf16.gmra.mxu3 %v2406_v39  ;;  %1021 = vmatpush.bf16.msrb.mxu2 %v1608_v52  ;;  %v1800_v37 = vor.u32 %v1954_v32, %v1797_v33  ;;  %v2524_v52 = vor.u32 %v1881_v42, %v1495_v41  ;;  %v2530_v56 = vor.u32 %v1880_v48, %v1505_v51  ;;  %v1749_v58 = vld [vmem:[%s2761_s1 + $0x1d8] sm:$0xf0]  ;;  %v1789_v61 = vld [vmem:[%s2761_s1 + $0x228] sm:$0xf0]  ;;  %v1940_v62 = vld [vmem:[%s2761_s1 + $0x1c4] sm:$0xf] }
  0x42   : > { %1050 = vmatpush.bf16.msrb.mxu3 %v1672_v57  ;;  %1075 = vmatpush.bf16.msra.mxu0 %v1768_v30  ;;  %v1942_v57 = vld [vmem:[%s2761_s1 + $0x1d4] sm:$0xf]  ;;  %v1741_v0 = vld [vmem:[%s2761_s1 + $0x1c8] sm:$0xf0]  ;;  %v1868_v3 = vld [vmem:[%s2274_s6 + $0x20] sm:$0xf0] }
  0x43   : > { %v1752_v59 = vor.u32 %v1942_v57, %v1749_v58  ;;  %v1938_v5 = vld [vmem:[%s2761_s1 + $0x1b4] sm:$0xf]  ;;  %v1725_v10 = vld [vmem:[%s2761_s1 + $0x1a8] sm:$0xf0]  ;;  %v1471_v11 = vld [vmem:[%s2274_s6 + $0x38] sm:$0xf] }
  0x44   : > { %993 = vmatpush.bf16.msrb.mxu1 %v1536_v45  ;;  %v1497_v45 = vld [vmem:[%s2274_s6 + $0x8c] sm:$0xf0]  ;;  %v1950_v8 = vld [vmem:[%s2761_s1 + $0x214] sm:$0xf]  ;;  %v1873_v12 = vld [vmem:[%s2274_s6 + $0x48] sm:$0xf0] }
  0x45   : > { %1022 = vmatpush.bf16.msrb.mxu2 %v1600_v1  ;;  %v2526_v54 = vor.u32 %v1879_v43, %v1497_v45  ;;  %v1744_v1 = vor.u32 %v1940_v62, %v1741_v0  ;;  %v1472_v13 = vor.u32 %v1873_v12, %v1471_v11  ;;  %v1934_v14 = vld [vmem:[%s2761_s1 + $0x194] sm:$0xf]  ;;  %v1491_v21 = vld [vmem:[%s2274_s6 + $0x60] sm:$0xf]  ;;  %v1883_v28 = vld [vmem:[%s2274_s6 + $0x98] sm:$0xf0] }
  0x46   : > { %1051 = vmatpush.bf16.msrb.mxu3 %v1664_v2  ;;  %1076 = vmatpush.bf16.msra.mxu0 %v1760_v40  ;;  %v1451_v2 = vld [vmem:[%s2274_s6 + $0x10] sm:$0xf]  ;;  %v1878_v22 = vld [vmem:[%s2274_s6 + $0x70] sm:$0xf0]  ;;  %v2617_v30 = vld [vmem:[%s2762_s2] sm:$0x3] }
  0x47   : > { %v1452_v4 = vor.u32 %v1868_v3, %v1451_v2  ;;  %v1963_v38 = vld [vmem:[%s2763_s3 + $0x38] sm:$0xff]  ;;  %v1961_v45 = vld [vmem:[%s2763_s3 + $0x28] sm:$0xff] }
  0x48   : > { %994 = vmatpush.bf16.msrb.mxu1 %v1528_v60  ;;  %v1952_v60 = vld [vmem:[%s2761_s1 + $0x224] sm:$0xf] }
  0x49   : > { %1023 = vmatpush.bf16.msrb.mxu2 %v1592_v15  ;;  %v1792_v63 = vor.u32 %v1952_v60, %v1789_v61  ;;  %v1717_v15 = vld [vmem:[%s2761_s1 + $0x198] sm:$0xf0]  ;;  %v1957_v61 = vld [vmem:[%s2763_s3 + $0x8] sm:$0xff] }
  0x4a   : > { %1052 = vmatpush.bf16.msrb.mxu3 %v1656_v17  ;;  %1077 = vmatpush.bf16.msra.mxu0 %v1752_v59  ;;  %v1720_v16 = vor.u32 %v1934_v14, %v1717_v15  ;;  %v1948_v17 = vld [vmem:[%s2761_s1 + $0x204] sm:$0xf]  ;;  %v1958_v59 = vld [vmem:[%s2763_s3 + $0x10] sm:$0xff] }
  0x4b   : > { %v1966_v15 = vld [vmem:[%s2763_s3 + $0x50] sm:$0xff] }
  0x4c   : > { %995 = vmatpush.bf16.msrb.mxu1 %v1520_v6  ;;  %v1733_v6 = vld [vmem:[%s2761_s1 + $0x1b8] sm:$0xf0] }
  0x4d   : > { %1024 = vmatpush.bf16.msrb.mxu2 %v1584_v26  ;;  %v1736_v7 = vor.u32 %v1938_v5, %v1733_v6  ;;  %v1492_v26 = vor.u32 %v1878_v22, %v1491_v21 }
  0x4e   : > { %861 = vmatmul.bf16.gmra.mxu0 %v2480_v20  ;;  %1053 = vmatpush.bf16.msrb.mxu3 %v1648_v27  ;;  %v1511_v27 = vld [vmem:[%s2274_s6 + $0x88] sm:$0xf] }
  0x4f   : > { %890 = vmatmul.bf16.gmra.mxu1 %v2488_v23  ;;  %1078 = vmatpush.bf16.msra.mxu0 %v1744_v1  ;;  %v1512_v29 = vor.u32 %v1883_v28, %v1511_v27 }
  0x50   : > { %919 = vmatmul.bf16.gmra.mxu2 %v2490_v24  ;;  %1108 = vmatpush.bf16.msra.mxu1 %v1800_v37 }
  0x51   : > { %948 = vmatmul.bf16.gmra.mxu3 %v2492_v25  ;;  %1269 = vmatpush.bf16.msra.mxu2 %v1963_v38 }
  0x53   : > { %1079 = vmatpush.bf16.msra.mxu0 %v1736_v7  ;;  %v1967_v7 = vld [vmem:[%s2763_s3 + $0x58] sm:$0xff] }
  0x54   : > { %1109 = vmatpush.bf16.msra.mxu1 %v1792_v63  ;;  %1302 = vmatpush.bf16.msra.mxu3 %v1967_v7 }
  0x58   : > { %1303 = vmatpush.bf16.msra.mxu3 %v1966_v15 }
  0x5e   : > { %866 = vmatmul.bf16.gmra.mxu0 %v2524_v52 }
  0x5f   : > { %895 = vmatmul.bf16.gmra.mxu1 %v2526_v54 }
  0x60   : > { %924 = vmatmul.bf16.gmra.mxu2 %v2528_v55 }
  0x61   : > { %953 = vmatmul.bf16.gmra.mxu3 %v2530_v56 }
  0x6e   : > { %1801 = vmatmul.msk.bf16.vlgmr.msrb.gmra.mxu0 %vm830_vm0, %v1452_v4 }
  0x6f   : > { %996 = vmatmul.bf16.vlgmr.msrb.gmra.mxu1 %v2291_v44  ;;  %v1781_v44 = vld [vmem:[%s2761_s1 + $0x218] sm:$0xf0] }
  0x70   : > { %1025 = vmatmul.bf16.vlgmr.msrb.gmra.mxu2 %v2298_v49  ;;  %v1936_v49 = vld [vmem:[%s2761_s1 + $0x1a4] sm:$0xf]  ;;  %v1784_v9 = vor.u32 %v1950_v8, %v1781_v44 }
  0x71   : > { %1054 = vmatmul.bf16.vlgmr.msrb.gmra.mxu3 %v2300_v50  ;;  %v1728_v50 = vor.u32 %v1936_v49, %v1725_v10 }
  0x72   : > { %1110 = vmatpush.bf16.msra.mxu1 %v1784_v9 }
  0x73   : > { %1080 = vmatpush.bf16.msra.mxu0 %v1728_v50 }
  0x77   : > { %1081 = vmatpush.bf16.msra.mxu0 %v1720_v16 }
  0x7e   : > { %1802 = vmatmul.msk.bf16.gmra.mxu0 %vm830_vm0, %v1472_v13 }
  0x7f   : > { %1001 = vmatmul.bf16.gmra.mxu1 %v2388_v31  ;;  %v1773_v31 = vld [vmem:[%s2761_s1 + $0x208] sm:$0xf0] }
  0x80   : > { %1030 = vmatmul.bf16.gmra.mxu2 %v2396_v35  ;;  %v1932_v35 = vld [vmem:[%s2761_s1 + $0x184] sm:$0xf]  ;;  %v1776_v18 = vor.u32 %v1948_v17, %v1773_v31 }
  0x81   : > { %1059 = vmatmul.bf16.gmra.mxu3 %v2398_v36  ;;  %v1709_v36 = vld [vmem:[%s2761_s1 + $0x188] sm:$0xf0] }
  0x82   : > { %v1712_v19 = vor.u32 %v1932_v35, %v1709_v36  ;;  %1111 = vmatpush.bf16.msra.mxu1 %v1776_v18 }
  0x84   : > { %1082 = vmatpush.bf16.msra.mxu0 %v1712_v19 }
  0x8e   : > { %1803 = vmatmul.msk.bf16.gmra.mxu0 %vm830_vm0, %v1492_v26 }
  0x8f   : > { %1006 = vmatmul.bf16.gmra.mxu1 %v2480_v20  ;;  %v2620_v20 = vperm.slane %v2617_v30, 0 }
  0x90   : > { %1035 = vmatmul.bf16.gmra.mxu2 %v2488_v23 }
  0x91   : > { %1064 = vmatmul.bf16.gmra.mxu3 %v2490_v24 }
  0x9e   : > { %1804 = vmatmul.msk.bf16.gmra.mxu0 %vm830_vm0, %v1512_v29 }
  0x9f   : > { %1011 = vmatmul.bf16.gmra.mxu1 %v2524_v52  ;;  %v1959_v52 = vld [vmem:[%s2763_s3 + $0x18] sm:$0xff] }
  0xa0   : > { %1040 = vmatmul.bf16.gmra.mxu2 %v2526_v54 }
  0xa1   : > { %1069 = vmatmul.bf16.gmra.mxu3 %v2528_v55 }
  0xab   : > { %v852_v23 = vpop.f32.mrf.mxu0 }
  0xac   : > { %v853_v24 = vadd.f32 %v852_v23, %v2620_v20  ;;  %v881_v32 = vpop.f32.mrf.mxu1 }
  0xae   : > { %v882_v33 = vadd.f32 %v881_v32, %v853_v24  ;;  %1083 = vmatmul.bf16.vlgmr.msra.gmra.mxu0 %v2308_v53  ;;  %v1962_v53 = vld [vmem:[%s2763_s3 + $0x30] sm:$0xff] }
  0xaf   : > { %1805 = vmatmul.msk.bf16.vlgmr.msra.gmra.mxu1 %vm830_vm0, %v1452_v4  ;;  %1270 = vmatpush.bf16.msra.mxu2 %v1962_v53 }
  0xb3   : > { %v854_v34 = vpop.f32.mrf.mxu0  ;;  %1271 = vmatpush.bf16.msra.mxu2 %v1961_v45  ;;  %v910_v48 = vpop.f32.mrf.mxu2 }
  0xb4   : > { %v883_v37 = vpop.f32.mrf.mxu1  ;;  %v939_v51 = vpop.f32.mrf.mxu3  ;;  %v855_v10 = vadd.f32 %v854_v34, %v2620_v20  ;;  %v911_v11 = vadd.f32 %v910_v48, %v882_v33 }
  0xb6   : > { %v884_v12 = vadd.f32 %v883_v37, %v855_v10  ;;  %v940_v16 = vadd.f32 %v939_v51, %v911_v11  ;;  %v1965_v37 = vld [vmem:[%s2763_s3 + $0x48] sm:$0xff] }
  0xb7   : > { %1304 = vmatpush.bf16.msra.mxu3 %v1965_v37 }
  0xbb   : > { %v857_v40 = vpop.f32.mrf.mxu0  ;;  %v912_v60 = vpop.f32.mrf.mxu2 }
  0xbc   : > { %v858_v41 = vadd.f32 %v857_v40, %v2620_v20  ;;  %v886_v42 = vpop.f32.mrf.mxu1  ;;  %v941_v62 = vpop.f32.mrf.mxu3  ;;  %v913_v14 = vadd.f32 %v912_v60, %v884_v12 }
  0xbe   : > { %v2629_v43 = vadd.f32 %v886_v42, %v858_v41  ;;  %1088 = vmatmul.bf16.gmra.mxu0 %v2406_v39  ;;  %v1960_v39 = vld [vmem:[%s2763_s3 + $0x20] sm:$0xff]  ;;  %v942_v31 = vadd.f32 %v941_v62, %v913_v14 }
  0xbf   : > { %1806 = vmatmul.msk.bf16.gmra.mxu1 %vm830_vm0, %v1472_v13  ;;  %1272 = vmatpush.bf16.msra.mxu2 %v1960_v39 }
  0xc3   : > { %v859_v46 = vpop.f32.mrf.mxu0  ;;  %1273 = vmatpush.bf16.msra.mxu2 %v1959_v52  ;;  %v915_v1 = vpop.f32.mrf.mxu2 }
  0xc4   : > { %v2639_v47 = vpop.f32.mrf.mxu1  ;;  %v944_v5 = vpop.f32.mrf.mxu3  ;;  %v860_v27 = vadd.f32 %v859_v46, %v2620_v20  ;;  %v916_v24 = vadd.f32 %v915_v1, %v2629_v43 }
  0xc6   : > { %v889_v32 = vadd.f32 %v2639_v47, %v860_v27  ;;  %v945_v38 = vadd.f32 %v944_v5, %v916_v24 }
  0xc7   : > { %1274 = vmatpush.bf16.msra.mxu2 %v1958_v59 }
  0xcb   : > { %v862_v54 = vpop.f32.mrf.mxu0  ;;  %1275 = vmatpush.bf16.msra.mxu2 %v1957_v61  ;;  %v917_v8 = vpop.f32.mrf.mxu2 }
  0xcc   : > { %v863_v55 = vadd.f32 %v862_v54, %v2620_v20  ;;  %v891_v57 = vpop.f32.mrf.mxu1  ;;  %v946_v9 = vpop.f32.mrf.mxu3  ;;  %v918_v34 = vadd.f32 %v917_v8, %v889_v32 }
  0xce   : > { %v2648_v58 = vadd.f32 %v891_v57, %v863_v55  ;;  %1093 = vmatmul.bf16.gmra.mxu0 %v2492_v25  ;;  %v1956_v25 = vld [vmem:[%s2763_s3] sm:$0xff]  ;;  %v947_v41 = vadd.f32 %v946_v9, %v918_v34 }
  0xcf   : > { %1807 = vmatmul.msk.bf16.gmra.mxu1 %vm830_vm0, %v1492_v26  ;;  %1276 = vmatpush.bf16.msra.mxu2 %v1956_v25  ;;  %v1964_v25 = vld [vmem:[%s2763_s3 + $0x40] sm:$0xff] }
  0xd0   : > { %1305 = vmatpush.bf16.msra.mxu3 %v1964_v25 }
  0xd3   : > { %v864_v63 = vpop.f32.mrf.mxu0 }
  0xd4   : > { %v2658_v0 = vpop.f32.mrf.mxu1  ;;  %v949_v17 = vpop.f32.mrf.mxu3  ;;  %v865_v47 = vadd.f32 %v864_v63, %v2620_v20 }
  0xd6   : > { %v894_v57 = vadd.f32 %v2658_v0, %v865_v47 }
  0xdb   : > { %v867_v2 = vpop.f32.mrf.mxu0 }
  0xdc   : > { %v868_v3 = vadd.f32 %v867_v2, %v2620_v20  ;;  %v896_v4 = vpop.f32.mrf.mxu1 }
  0xde   : > { %v2664_v6 = vadd.f32 %v896_v4, %v868_v3  ;;  %1098 = vmatmul.bf16.gmra.mxu0 %v2530_v56  ;;  %v920_v56 = vpop.f32.mrf.mxu2 }
  0xdf   : > { %1808 = vmatmul.msk.bf16.gmra.mxu1 %vm830_vm0, %v1512_v29  ;;  %v951_v29 = vpop.f32.mrf.mxu3  ;;  %v921_v55 = vadd.f32 %v920_v56, %v2648_v58 }
  0xe1   : > { %v950_v62 = vadd.f32 %v949_v17, %v921_v55 }
  0xe3   : > { %v2671_v44 = vpop.f32.mrf.mxu0 }
  0xe4   : > { %v2673_v49 = vpop.f32.mrf.mxu1  ;;  %v870_v0 = vadd.f32 %v2671_v44, %v2620_v20 }
  0xe6   : > { %v922_v26 = vpop.f32.mrf.mxu2  ;;  %v899_v11 = vadd.f32 %v2673_v49, %v870_v0 }
  0xe7   : > { %v954_v48 = vpop.f32.mrf.mxu3  ;;  %v923_v60 = vadd.f32 %v922_v26, %v894_v57 }
  0xe9   : > { %v952_v1 = vadd.f32 %v951_v29, %v923_v60 }
  0xeb   : > { %v968_v50 = vpop.f32.mrf.mxu0 }
  0xec   : > { %v2676_v13 = vpop.f32.mrf.mxu1  ;;  %v969_v35 = vadd.f32 %v968_v50, %v940_v16 }
  0xee   : > { %v1133_v21 = vmax.f32 %v969_v35, 0.0  ;;  %v925_v40 = vpop.f32.mrf.mxu2 }
  0xef   : > { %v956_v61 = vpop.f32.mrf.mxu3  ;;  %v926_v50 = vadd.f32 %v925_v40, %v2664_v6 }
  0xf1   : > { %v955_v15 = vadd.f32 %v954_v48, %v926_v50 }
  0xf3   : > { %v970_v18 = vpop.f32.mrf.mxu0 }
  0xf4   : > { %v971_v36 = vadd.f32 %v970_v18, %v942_v31  ;;  %v2681_v19 = vpop.f32.mrf.mxu1  ;;  %v2710_v18 = vperm.slane %v2617_v30, 1 }
  0xf6   : > { %v1135_v22 = vmax.f32 %v971_v36, 0.0  ;;  %v927_v52 = vpop.f32.mrf.mxu2  ;;  %v998_v6 = vadd.f32 %v2676_v13, %v2710_v18 }
  0xf7   : > { %v1055_v9 = vpop.f32.mrf.mxu3  ;;  %v928_v56 = vadd.f32 %v927_v52, %v899_v11 }
  0xf8   : > { %v1149_v28 = vpack.c.bf16 %v1135_v22, %v1133_v21 }
  0xf9   : > { %v957_v16 = vadd.f32 %v956_v61, %v928_v56 }
  0xfa   : > { %1277 = vmatmul.bf16.vlgmr.msra.gmra.mxu2 %v1149_v28  ;;  %v1000_v28 = vadd.f32 %v2681_v19, %v2710_v18 }
  0xfb   : > { %v973_v23 = vpop.f32.mrf.mxu0 }
  0xfc   : > { %v2686_v33 = vpop.f32.mrf.mxu1  ;;  %v974_v42 = vadd.f32 %v973_v23, %v945_v38 }
  0xfe   : > { %v1137_v43 = vmax.f32 %v974_v42, 0.0  ;;  %v1026_v5 = vpop.f32.mrf.mxu2 }
  0xff   : > { %v1057_v31 = vpop.f32.mrf.mxu3  ;;  %v1027_v26 = vadd.f32 %v1026_v5, %v998_v6 }
 0x101   : > { %v1056_v30 = vadd.f32 %v1055_v9, %v1027_v26 }
 0x103   : > { %v975_v53 = vpop.f32.mrf.mxu0 }
 0x104   : > { %v976_v45 = vadd.f32 %v975_v53, %v947_v41  ;;  %v2691_v46 = vpop.f32.mrf.mxu1 }
 0x106   : > { %v1139_v39 = vmax.f32 %v976_v45, 0.0  ;;  %v1028_v14 = vpop.f32.mrf.mxu2  ;;  %v1003_v45 = vadd.f32 %v2686_v33, %v2710_v18 }
 0x107   : > { %v1060_v23 = vpop.f32.mrf.mxu3  ;;  %v1029_v24 = vadd.f32 %v1028_v14, %v1000_v28 }
 0x108   : > { %v1151_v51 = vpack.c.bf16 %v1139_v39, %v1137_v43 }
 0x109   : > { %v1058_v34 = vadd.f32 %v1057_v31, %v1029_v24 }
 0x10a   : > { %1282 = vmatmul.bf16.gmra.mxu2 %v1151_v51  ;;  %v1005_v51 = vadd.f32 %v2691_v46, %v2710_v18 }
 0x10b   : > { %v978_v54 = vpop.f32.mrf.mxu0 }
 0x10c   : > { %v2696_v59 = vpop.f32.mrf.mxu1  ;;  %v979_v2 = vadd.f32 %v978_v54, %v950_v62 }
 0x10d   : > { %v1008_v5 = vadd.f32 %v2696_v59, %v2710_v18 }
 0x10e   : > { %v1141_v58 = vmax.f32 %v979_v2, 0.0  ;;  %v1031_v22 = vpop.f32.mrf.mxu2 }
 0x10f   : > { %v1062_v53 = vpop.f32.mrf.mxu3  ;;  %v1032_v39 = vadd.f32 %v1031_v22, %v1003_v45  ;;  %v1993_v45 = vld [vmem:[%s2764_s4] ss:$0 sm:$0xff] }
 0x111   : > { %v1061_v55 = vadd.f32 %v1060_v23, %v1032_v39 }
 0x113   : > { %v980_v63 = vpop.f32.mrf.mxu0 }
 0x114   : > { %v981_v3 = vadd.f32 %v980_v63, %v952_v1  ;;  %v2701_v4 = vpop.f32.mrf.mxu1 }
 0x116   : > { %v1143_v7 = vmax.f32 %v981_v3, 0.0  ;;  %v1033_v37 = vpop.f32.mrf.mxu2 }
 0x117   : > { %v1034_v57 = vadd.f32 %v1033_v37, %v1005_v51  ;;  %v1065_v61 = vpop.f32.mrf.mxu3 }
 0x118   : > { %v1153_v8 = vpack.c.bf16 %v1143_v7, %v1141_v58 }
 0x119   : > { %v1063_v62 = vadd.f32 %v1062_v53, %v1034_v57 }
 0x11a   : > { %1287 = vmatmul.bf16.gmra.mxu2 %v1153_v8 }
 0x11b   : > { %v983_v10 = vpop.f32.mrf.mxu0 }
 0x11c   : > { %v2707_v12 = vpop.f32.mrf.mxu1  ;;  %v984_v17 = vadd.f32 %v983_v10, %v955_v15  ;;  %v1010_v10 = vadd.f32 %v2701_v4, %v2710_v18 }
 0x11e   : > { %v1145_v36 = vmax.f32 %v984_v17, 0.0  ;;  %v1036_v54 = vpop.f32.mrf.mxu2 }
 0x11f   : > { %v1037_v7 = vadd.f32 %v1036_v54, %v1008_v5  ;;  %v1067_v8 = vpop.f32.mrf.mxu3 }
 0x121   : > { %v1066_v11 = vadd.f32 %v1065_v61, %v1037_v7 }
 0x123   : > { %v985_v35 = vpop.f32.mrf.mxu0 }
 0x124   : > { %v986_v20 = vadd.f32 %v985_v35, %v957_v16  ;;  %v2712_v44 = vpop.f32.mrf.mxu1 }
 0x125   : > { %v1015_v28 = vadd.f32 %v2712_v44, %v2710_v18 }
 0x126   : > { %v1147_v21 = vmax.f32 %v986_v20, 0.0  ;;  %v1038_v3 = vpop.f32.mrf.mxu2 }
 0x127   : > { %v1039_v56 = vadd.f32 %v1038_v3, %v1010_v10  ;;  %v1070_v20 = vpop.f32.mrf.mxu3 }
 0x128   : > { %v1155_v49 = vpack.c.bf16 %v1147_v21, %v1145_v36  ;;  %v1013_v21 = vadd.f32 %v2707_v12, %v2710_v18 }
 0x129   : > { %v1068_v16 = vadd.f32 %v1067_v8, %v1039_v56 }
 0x12a   : > { %1292 = vmatmul.bf16.gmra.mxu2 %v1155_v49 }
 0x12b   : > { %v1084_v27 = vpop.f32.mrf.mxu0 }
 0x12c   : > { %v1113_v29 = vpop.f32.mrf.mxu1  ;;  %v1085_v32 = vadd.f32 %v1084_v27, %v1056_v30 }
 0x12e   : > { %v1114_v40 = vadd.f32 %v1113_v29, %v1085_v32  ;;  %v1041_v15 = vpop.f32.mrf.mxu2 }
 0x12f   : > { %v1042_v4 = vadd.f32 %v1041_v15, %v1013_v21  ;;  %v1072_v24 = vpop.f32.mrf.mxu3 }
 0x130   : > { %v1134_v48 = vmax.f32 %v1114_v40, 0.0 }
 0x131   : > { %v1071_v23 = vadd.f32 %v1070_v20, %v1042_v4 }
 0x133   : > { %v1086_v38 = vpop.f32.mrf.mxu0 }
 0x134   : > { %v1087_v41 = vadd.f32 %v1086_v38, %v1058_v34  ;;  %v1115_v42 = vpop.f32.mrf.mxu1 }
 0x136   : > { %v1116_v13 = vadd.f32 %v1115_v42, %v1087_v41  ;;  %v1043_v26 = vpop.f32.mrf.mxu2 }
 0x137   : > { %v1044_v30 = vadd.f32 %v1043_v26, %v1015_v28 }
 0x138   : > { %v1136_v43 = vmax.f32 %v1116_v13, 0.0 }
 0x139   : > { %v1073_v34 = vadd.f32 %v1072_v24, %v1044_v30 }
 0x13a   : > { %v1150_v19 = vpack.c.bf16 %v1136_v43, %v1134_v48 }
 0x13b   : > { %v1089_v47 = vpop.f32.mrf.mxu0 }
 0x13c   : > { %v1118_v52 = vpop.f32.mrf.mxu1  ;;  %1857 = vmatmul.msk.bf16.vlgmr.msra.gmra.mxu3 %vm830_vm0, %v1150_v19  ;;  %v1090_v60 = vadd.f32 %v1089_v47, %v1061_v55 }
 0x13e   : > { %v1119_v1 = vadd.f32 %v1118_v52, %v1090_v60 }
 0x140   : > { %v1138_v58 = vmax.f32 %v1119_v1, 0.0 }
 0x143   : > { %v1091_v25 = vpop.f32.mrf.mxu0 }
 0x144   : > { %v1092_v33 = vadd.f32 %v1091_v25, %v1063_v62  ;;  %v1120_v2 = vpop.f32.mrf.mxu1 }
 0x146   : > { %v1121_v63 = vadd.f32 %v1120_v2, %v1092_v33 }
 0x148   : > { %v1140_v46 = vmax.f32 %v1121_v63, 0.0 }
 0x14a   : > { %v1152_v0 = vpack.c.bf16 %v1140_v46, %v1138_v58 }
 0x14b   : > { %v1094_v9 = vpop.f32.mrf.mxu0 }
 0x14c   : > { %v1123_v50 = vpop.f32.mrf.mxu1  ;;  %1858 = vmatmul.msk.bf16.gmra.mxu3 %vm830_vm0, %v1152_v0  ;;  %v1095_v14 = vadd.f32 %v1094_v9, %v1066_v11 }
 0x14e   : > { %v1124_v31 = vadd.f32 %v1123_v50, %v1095_v14 }
 0x150   : > { %v1142_v6 = vmax.f32 %v1124_v31, 0.0 }
 0x153   : > { %v1096_v17 = vpop.f32.mrf.mxu0 }
 0x154   : > { %v1097_v59 = vadd.f32 %v1096_v17, %v1068_v16  ;;  %v1125_v35 = vpop.f32.mrf.mxu1 }
 0x156   : > { %v1126_v36 = vadd.f32 %v1125_v35, %v1097_v59 }
 0x158   : > { %v1144_v49 = vmax.f32 %v1126_v36, 0.0 }
 0x15a   : > { %v1154_v22 = vpack.c.bf16 %v1144_v49, %v1142_v6 }
 0x15b   : > { %v1099_v27 = vpop.f32.mrf.mxu0 }
 0x15c   : > { %v1128_v29 = vpop.f32.mrf.mxu1  ;;  %1859 = vmatmul.msk.bf16.gmra.mxu3 %vm830_vm0, %v1154_v22  ;;  %v1100_v32 = vadd.f32 %v1099_v27, %v1071_v23 }
 0x15e   : > { %v1129_v12 = vadd.f32 %v1128_v29, %v1100_v32 }
 0x160   : > { %v1146_v42 = vmax.f32 %v1129_v12, 0.0 }
 0x163   : > { %v1101_v37 = vpop.f32.mrf.mxu0 }
 0x164   : > { %v1102_v38 = vadd.f32 %v1101_v37, %v1073_v34  ;;  %v1130_v40 = vpop.f32.mrf.mxu1 }
 0x166   : > { %v1131_v41 = vadd.f32 %v1130_v40, %v1102_v38 }
 0x168   : > { %v1148_v13 = vmax.f32 %v1131_v41, 0.0 }
 0x16a   : > { %v1156_v53 = vpack.c.bf16 %v1148_v13, %v1146_v42 }
 0x16c   : > { %1860 = vmatmul.msk.bf16.gmra.mxu3 %vm830_vm0, %v1156_v53 }
 0x17d   : > { %v1278_v18 = vpop.f32.mrf.mxu2 }
 0x17e   : > { %v1279_v48 = vadd.f32 %v1993_v45, %v1278_v18 }
 0x185   : > { %v1280_v44 = vpop.f32.mrf.mxu2 }
 0x186   : > { %v1281_v47 = vadd.f32 %v1993_v45, %v1280_v44 }
 0x18d   : > { %v1283_v19 = vpop.f32.mrf.mxu2 }
 0x18e   : > { %v1284_v55 = vadd.f32 %v1993_v45, %v1283_v19 }
 0x195   : > { %v1285_v54 = vpop.f32.mrf.mxu2 }
 0x196   : > { %v1286_v62 = vadd.f32 %v1993_v45, %v1285_v54 }
 0x19d   : > { %v1288_v61 = vpop.f32.mrf.mxu2 }
 0x19e   : > { %v1289_v33 = vadd.f32 %v1993_v45, %v1288_v61 }
 0x1a5   : > { %v1290_v2 = vpop.f32.mrf.mxu2 }
 0x1a6   : > { %v1291_v5 = vadd.f32 %v1993_v45, %v1290_v2 }
 0x1ad   : > { %v1293_v7 = vpop.f32.mrf.mxu2 }
 0x1ae   : > { %v1294_v0 = vadd.f32 %v1993_v45, %v1293_v7 }
 0x1b5   : > { %v1295_v10 = vpop.f32.mrf.mxu2 }
 0x1b6   : > { %v1296_v50 = vadd.f32 %v1993_v45, %v1295_v10 }
 0x1bf   : > { %v1307_v43 = vpop.f32.mrf.mxu3 }
 0x1c0   : > { %v1308_v39 = vadd.f32 %v1307_v43, %v1279_v48 }
 0x1c2   : > { %1327 = vst [vmem:[%s2741_s12] sm:$0xff] %v1308_v39 }
 0x1c7   : > { %v1309_v51 = vpop.f32.mrf.mxu3 }
 0x1c8   : > { %v1310_v52 = vadd.f32 %v1309_v51, %v1281_v47 }
 0x1ca   : > { %1328 = vst [vmem:[%s2741_s12 + $0x8] sm:$0xff] %v1310_v52 }
 0x1cf   : > { %v1312_v57 = vpop.f32.mrf.mxu3 }
 0x1d0   : > { %v1313_v60 = vadd.f32 %v1312_v57, %v1284_v55 }
 0x1d2   : > { %1329 = vst [vmem:[%s2741_s12 + $0x10] sm:$0xff] %v1313_v60 }
 0x1d7   : > { %v1314_v25 = vpop.f32.mrf.mxu3 }
 0x1d8   : > { %v1315_v1 = vadd.f32 %v1314_v25, %v1286_v62 }
 0x1da   : > { %1330 = vst [vmem:[%s2741_s12 + $0x18] sm:$0xff] %v1315_v1 }
 0x1df   : > { %v1317_v63 = vpop.f32.mrf.mxu3 }
 0x1e0   : > { %v1318_v3 = vadd.f32 %v1317_v63, %v1289_v33 }
 0x1e2   : > { %1331 = vst [vmem:[%s2741_s12 + $0x20] sm:$0xff] %v1318_v3 }
 0x1e7   : > { %v1319_v58 = vpop.f32.mrf.mxu3 }
 0x1e8   : > { %v1320_v46 = vadd.f32 %v1319_v58, %v1291_v5 }
 0x1ea   : > { %1332 = vst [vmem:[%s2741_s12 + $0x28] sm:$0xff] %v1320_v46 }
 0x1ef   : > { %v1322_v8 = vpop.f32.mrf.mxu3 }
 0x1f0   : > { %v1323_v9 = vadd.f32 %v1322_v8, %v1294_v0 }
 0x1f2   : > { %1333 = vst [vmem:[%s2741_s12 + $0x30] sm:$0xff] %v1323_v9 }
 0x1f7   : > { %v1324_v11 = vpop.f32.mrf.mxu3 }
 0x1f8   : > { %v1325_v56 = vadd.f32 %v1324_v11, %v1296_v50 }
 0x1fa   : > { %1334 = vst [vmem:[%s2741_s12 + $0x38] sm:$0xff] %v1325_v56 }
 0x1fb PF: > { %s15_s20 = sadd.s32 1, %s2016_s20   ;;  %s2766_s18 = smov %s2012_s19 }
 0x1fc   : > { %p12_p5 = scmp.ge.s32.totalorder %s15_s20, 4   ;;  %s2767_s19 = smov %s2769_s21 }
 0x1fe   :  { %14 = sbr.rel (!%p12_p5) target bundleno = 2 (0x2), region = 70 }

</bundles_post_ra>
